<compile_context>
chip_gen: v7x
topology: tpu7x:2x2x1
jax: 0.10.0
libtpu: 0.0.40
codegen_flags: <defaults>
</compile_context>

<pallas_src>
import jax
import jax.numpy as jnp
from jax.experimental import pallas as pl
from jax.experimental.pallas import tpu as pltpu


def vae_fwd_kernel(
    x_ref,        # [TB, D]   flattened input tile
    w1_ref,       # [D, L]    fc1 weight (in, out)
    b1_ref,       # [1, L]
    wml_ref,      # [L, 2L]   fused [fc_mu | fc_logvar] weight (in, out)
    bml_ref,      # [1, 2L]
    w3_ref,       # [L, D]    fc3 weight (in, out)
    b3_ref,       # [1, D]
    eps_ref,      # [TB, L]   reparameterization noise
    recon_ref,    # [TB, D]   out: x_recon
    mu_ref,       # [TB, L]   out: mu
    logvar_ref,   # [TB, L]   out: logvar
):
    L = mu_ref.shape[-1]
    x = x_ref[...]

    # encode: h1 = relu(x @ W1 + b1)
    h1 = jnp.dot(x, w1_ref[...], preferred_element_type=jnp.float32) + b1_ref[...]
    h1 = jnp.maximum(h1, 0.0).astype(wml_ref.dtype)

    # fused mu/logvar: [TB, 2L] = h1 @ [W_mu | W_logvar]
    ml = jnp.dot(h1, wml_ref[...], preferred_element_type=jnp.float32) + bml_ref[...]
    mu = ml[:, :L]
    logvar = ml[:, L:]

    # reparameterize: z = mu + eps * exp(0.5 * logvar)
    std = jnp.exp(0.5 * logvar)
    z = mu + eps_ref[...].astype(jnp.float32) * std

    # decode: x_recon = sigmoid(z @ W3 + b3)
    logits = (jnp.dot(z.astype(w3_ref.dtype), w3_ref[...],
                      preferred_element_type=jnp.float32) + b3_ref[...])
    recon_ref[...] = jax.nn.sigmoid(logits).astype(recon_ref.dtype)
    mu_ref[...] = mu.astype(mu_ref.dtype)
    logvar_ref[...] = logvar.astype(logvar_ref.dtype)


def init_params(key, image_size, latent_dim, dtype=jnp.float32):
    """nn.Linear-style init, but stored pre-transposed (in, out) and with
    fc_mu/fc_logvar fused along the output axis — done ONCE here so the
    forward path never re-transposes weights in HBM."""
    def linear(k, in_f, out_f):
        kw, kb = jax.random.split(k)
        bound = 1.0 / jnp.sqrt(in_f)
        w = jax.random.uniform(kw, (out_f, in_f), jnp.float32, -bound, bound)
        b = jax.random.uniform(kb, (out_f,), jnp.float32, -bound, bound)
        return w, b

    k1, k2, k3, k4 = jax.random.split(key, 4)
    w1, b1 = linear(k1, image_size, latent_dim)
    wmu, bmu = linear(k2, latent_dim, latent_dim)
    wlv, blv = linear(k3, latent_dim, latent_dim)
    w3, b3 = linear(k4, latent_dim, image_size)

    return {
        "w1t": w1.T.astype(dtype),                                        # [D, L]
        "b1": b1.reshape(1, latent_dim).astype(dtype),                    # [1, L]
        "wmlt": jnp.concatenate([wmu.T, wlv.T], axis=1).astype(dtype),    # [L, 2L]
        "bml": jnp.concatenate([bmu, blv]).reshape(1, 2 * latent_dim).astype(dtype),
        "w3t": w3.T.astype(dtype),                                        # [L, D]
        "b3": b3.reshape(1, image_size).astype(dtype),                    # [1, D]
    }


def vae_forward(x_img, params, eps, *, batch_block=256, compute_dtype=jnp.float32):
    """x_img: [B, C, H, W]; params: dict from init_params; eps: [B, L]."""
    B = x_img.shape[0]
    x = x_img.reshape(B, -1).astype(compute_dtype)   # glue: matches x.view(B, -1)
    D = x.shape[1]
    L = params["b1"].shape[-1]

    # Batch tile: multiple of 8 (sublane), capped by batch_block; pad B up to it.
    TB = min(batch_block, ((B + 7) // 8) * 8)
    TB = ((TB + 7) // 8) * 8
    B_pad = pl.cdiv(B, TB) * TB

    eps = eps.astype(compute_dtype)
    if B_pad != B:
        x = jnp.pad(x, ((0, B_pad - B), (0, 0)))
        eps = jnp.pad(eps, ((0, B_pad - B), (0, 0)))

    w1t = params["w1t"].astype(compute_dtype)
    b1 = params["b1"].astype(compute_dtype)
    wmlt = params["wmlt"].astype(compute_dtype)
    bml = params["bml"].astype(compute_dtype)
    w3t = params["w3t"].astype(compute_dtype)
    b3 = params["b3"].astype(compute_dtype)

    # Activation tiles advance with the grid; weights stay on block (0, 0)
    # (resident in VMEM, DMA'd once).
    act = lambda shape: pl.BlockSpec(shape, lambda i: (i, 0))
    res = lambda shape: pl.BlockSpec(shape, lambda i: (0, 0))

    in_specs = [
        act((TB, D)),                       # x
        res((D, L)), res((1, L)),           # fc1
        res((L, 2 * L)), res((1, 2 * L)),   # fused fc_mu|fc_logvar
        res((L, D)), res((1, D)),           # fc3
        act((TB, L)),                       # eps
    ]
    out_specs = (act((TB, D)), act((TB, L)), act((TB, L)))
    out_shape = (
        jax.ShapeDtypeStruct((B_pad, D), jnp.float32),
        jax.ShapeDtypeStruct((B_pad, L), jnp.float32),
        jax.ShapeDtypeStruct((B_pad, L), jnp.float32),
    )

    recon, mu, logvar = pl.pallas_call(
        vae_fwd_kernel,
        out_shape=out_shape,
        grid=(B_pad // TB,),
        in_specs=in_specs,
        out_specs=out_specs,
        compiler_params=pltpu.CompilerParams(
            dimension_semantics=("parallel",),   # shard batch grid across TCs (v7x)
        ),
    )(x, w1t, b1, wmlt, bml, w3t, b3, eps)

    if B_pad != B:
        recon, mu, logvar = recon[:B], mu[:B], logvar[:B]
    return recon, mu, logvar


def reference_forward(x_img, params, eps):
    """Pure-JAX reference using the same pre-transposed/fused params."""
    B = x_img.shape[0]
    x = x_img.reshape(B, -1).astype(jnp.float32)
    L = params["b1"].shape[-1]
    h1 = jax.nn.relu(x @ params["w1t"] + params["b1"])
    ml = h1 @ params["wmlt"] + params["bml"]
    mu, logvar = ml[:, :L], ml[:, L:]
    z = mu + eps * jnp.exp(0.5 * logvar)
    x_recon = jax.nn.sigmoid(z @ params["w3t"] + params["b3"])
    return x_recon, mu, logvar


if __name__ == "__main__":
    # Small, module-consistent shapes: image flattens to image_size features.
    # Batch raised to 256 so the batch grid / MXU M-dimension is exercised.
    B, C, H, W = 256, 4, 8, 8          # -> image_size = 4*8*8 = 256
    image_size = C * H * W
    latent_dim = 128

    key = jax.random.PRNGKey(0)
    kx, keps, kp = jax.random.split(key, 3)

    x_img = jax.random.uniform(kx, (B, C, H, W), jnp.float32)     # NCHW input
    eps = jax.random.normal(keps, (B, latent_dim), jnp.float32)   # reparam noise
    params = init_params(kp, image_size, latent_dim)

    recon, mu, logvar = vae_forward(x_img, params, eps, batch_block=128)
    jax.block_until_ready((recon, mu, logvar))

    r_recon, r_mu, r_logvar = reference_forward(x_img, params, eps)
    assert jnp.allclose(recon, r_recon, atol=1e-5, rtol=1e-5)
    assert jnp.allclose(mu, r_mu, atol=1e-4, rtol=1e-4)
    assert jnp.allclose(logvar, r_logvar, atol=1e-4, rtol=1e-4)

    print("KERNEL_OK")
</pallas_src>

<mosaic_0001>
module attributes {stable_mosaic.version = 11 : i64} {
  func.func @vae_fwd_kernel(%arg0: i32, %arg1: memref<128x256xf32, #tpu.memory_space<vmem>>, %arg2: memref<256x128xf32, #tpu.memory_space<vmem>>, %arg3: memref<1x128xf32, #tpu.memory_space<vmem>>, %arg4: memref<128x256xf32, #tpu.memory_space<vmem>>, %arg5: memref<1x256xf32, #tpu.memory_space<vmem>>, %arg6: memref<128x256xf32, #tpu.memory_space<vmem>>, %arg7: memref<1x256xf32, #tpu.memory_space<vmem>>, %arg8: memref<128x128xf32, #tpu.memory_space<vmem>>, %arg9: memref<128x256xf32, #tpu.memory_space<vmem>>, %arg10: memref<128x128xf32, #tpu.memory_space<vmem>>, %arg11: memref<128x128xf32, #tpu.memory_space<vmem>>) attributes {dimension_semantics = [#tpu.dimension_semantics<parallel>], iteration_bounds = array<i64: 2>, scalar_prefetch = 0 : i64, scratch_operands = 0 : i64, tpu.core_type = #tpu.core_type<tc>, window_params = [{transform_indices = @transform_0, window_bounds = array<i64: 128, 256>}, {pipeline_mode = #tpu.pipeline_mode<synchronous>, transform_indices = @transform_1, window_bounds = array<i64: 256, 128>}, {pipeline_mode = #tpu.pipeline_mode<synchronous>, transform_indices = @transform_2, window_bounds = array<i64: 1, 128>}, {pipeline_mode = #tpu.pipeline_mode<synchronous>, transform_indices = @transform_3, window_bounds = array<i64: 128, 256>}, {pipeline_mode = #tpu.pipeline_mode<synchronous>, transform_indices = @transform_4, window_bounds = array<i64: 1, 256>}, {pipeline_mode = #tpu.pipeline_mode<synchronous>, transform_indices = @transform_5, window_bounds = array<i64: 128, 256>}, {pipeline_mode = #tpu.pipeline_mode<synchronous>, transform_indices = @transform_6, window_bounds = array<i64: 1, 256>}, {transform_indices = @transform_7, window_bounds = array<i64: 128, 128>}, {transform_indices = @transform_8, window_bounds = array<i64: 128, 256>}, {transform_indices = @transform_9, window_bounds = array<i64: 128, 128>}, {transform_indices = @transform_10, window_bounds = array<i64: 128, 128>}]} {
    %c0 = arith.constant 0 : index
    %c0_0 = arith.constant 0 : index
    %0 = vector.load %arg1[%c0, %c0_0] : memref<128x256xf32, #tpu.memory_space<vmem>>, vector<128x256xf32>
    %c0_1 = arith.constant 0 : index
    %c0_2 = arith.constant 0 : index
    %1 = vector.load %arg2[%c0_1, %c0_2] : memref<256x128xf32, #tpu.memory_space<vmem>>, vector<256x128xf32>
    %cst = arith.constant dense<0.000000e+00> : vector<128x128xf32>
    %2 = tpu.matmul %0, %1, %cst {dimension_numbers = #tpu.dot_dimension_numbers<[1], [0], [0], [1], [0, 0, 1, 1], [], []>} : vector<128x256xf32>, vector<256x128xf32>, vector<128x128xf32> -> vector<128x128xf32>
    %c0_3 = arith.constant 0 : index
    %c0_4 = arith.constant 0 : index
    %3 = vector.load %arg3[%c0_3, %c0_4] : memref<1x128xf32, #tpu.memory_space<vmem>>, vector<1x128xf32>
    %4 = vector.broadcast %3 : vector<1x128xf32> to vector<128x128xf32>
    %5 = arith.addf %2, %4 : vector<128x128xf32>
    %cst_5 = arith.constant 0.000000e+00 : f32
    %6 = vector.broadcast %cst_5 : f32 to vector<128x128xf32>
    %7 = arith.maximumf %5, %6 : vector<128x128xf32>
    %c0_6 = arith.constant 0 : index
    %c0_7 = arith.constant 0 : index
    %8 = vector.load %arg4[%c0_6, %c0_7] : memref<128x256xf32, #tpu.memory_space<vmem>>, vector<128x256xf32>
    %cst_8 = arith.constant dense<0.000000e+00> : vector<128x256xf32>
    %9 = tpu.matmul %7, %8, %cst_8 {dimension_numbers = #tpu.dot_dimension_numbers<[1], [0], [0], [1], [0, 0, 1, 1], [], []>} : vector<128x128xf32>, vector<128x256xf32>, vector<128x256xf32> -> vector<128x256xf32>
    %c0_9 = arith.constant 0 : index
    %c0_10 = arith.constant 0 : index
    %10 = vector.load %arg5[%c0_9, %c0_10] : memref<1x256xf32, #tpu.memory_space<vmem>>, vector<1x256xf32>
    %11 = vector.broadcast %10 : vector<1x256xf32> to vector<128x256xf32>
    %12 = arith.addf %9, %11 : vector<128x256xf32>
    %13 = vector.extract_strided_slice %12 {offsets = [0, 0], sizes = [128, 128], strides = [1, 1]} : vector<128x256xf32> to vector<128x128xf32>
    %14 = vector.extract_strided_slice %12 {offsets = [0, 128], sizes = [128, 128], strides = [1, 1]} : vector<128x256xf32> to vector<128x128xf32>
    %cst_11 = arith.constant 5.000000e-01 : f32
    %15 = vector.broadcast %cst_11 : f32 to vector<128x128xf32>
    %16 = arith.mulf %15, %14 : vector<128x128xf32>
    %17 = math.exp %16 : vector<128x128xf32>
    %c0_12 = arith.constant 0 : index
    %c0_13 = arith.constant 0 : index
    %18 = vector.load %arg8[%c0_12, %c0_13] : memref<128x128xf32, #tpu.memory_space<vmem>>, vector<128x128xf32>
    %19 = arith.mulf %18, %17 : vector<128x128xf32>
    %20 = arith.addf %13, %19 : vector<128x128xf32>
    %c0_14 = arith.constant 0 : index
    %c0_15 = arith.constant 0 : index
    %21 = vector.load %arg6[%c0_14, %c0_15] : memref<128x256xf32, #tpu.memory_space<vmem>>, vector<128x256xf32>
    %cst_16 = arith.constant dense<0.000000e+00> : vector<128x256xf32>
    %22 = tpu.matmul %20, %21, %cst_16 {dimension_numbers = #tpu.dot_dimension_numbers<[1], [0], [0], [1], [0, 0, 1, 1], [], []>} : vector<128x128xf32>, vector<128x256xf32>, vector<128x256xf32> -> vector<128x256xf32>
    %c0_17 = arith.constant 0 : index
    %c0_18 = arith.constant 0 : index
    %23 = vector.load %arg7[%c0_17, %c0_18] : memref<1x256xf32, #tpu.memory_space<vmem>>, vector<1x256xf32>
    %24 = vector.broadcast %23 : vector<1x256xf32> to vector<128x256xf32>
    %25 = arith.addf %22, %24 : vector<128x256xf32>
    %26 = arith.negf %25 : vector<128x256xf32>
    %27 = math.exp %26 : vector<128x256xf32>
    %cst_19 = arith.constant 1.000000e+00 : f32
    %28 = vector.broadcast %cst_19 : f32 to vector<128x256xf32>
    %29 = arith.addf %28, %27 : vector<128x256xf32>
    %30 = arith.divf %28, %29 : vector<128x256xf32>
    %c0_20 = arith.constant 0 : index
    %c0_21 = arith.constant 0 : index
    %31 = vector.load %arg9[%c0_20, %c0_21] : memref<128x256xf32, #tpu.memory_space<vmem>>, vector<128x256xf32>
    tpu.vector_store %arg9[%c0_20, %c0_21], %30 {strides = array<i32>} : memref<128x256xf32, #tpu.memory_space<vmem>>, vector<128x256xf32>,
    %c0_22 = arith.constant 0 : index
    %c0_23 = arith.constant 0 : index
    %32 = vector.load %arg10[%c0_22, %c0_23] : memref<128x128xf32, #tpu.memory_space<vmem>>, vector<128x128xf32>
    tpu.vector_store %arg10[%c0_22, %c0_23], %13 {strides = array<i32>} : memref<128x128xf32, #tpu.memory_space<vmem>>, vector<128x128xf32>,
    %c0_24 = arith.constant 0 : index
    %c0_25 = arith.constant 0 : index
    %33 = vector.load %arg11[%c0_24, %c0_25] : memref<128x128xf32, #tpu.memory_space<vmem>>, vector<128x128xf32>
    tpu.vector_store %arg11[%c0_24, %c0_25], %14 {strides = array<i32>} : memref<128x128xf32, #tpu.memory_space<vmem>>, vector<128x128xf32>,
    return
  }
  func.func @transform_0(%arg0: i32) -> (i32, i32) {
    %c0_i32 = arith.constant 0 : i32
    %c0_i32_0 = arith.constant 0 : i32
    return %arg0, %c0_i32 : i32, i32
  }
  func.func @transform_1(%arg0: i32) -> (i32, i32) {
    %c0_i32 = arith.constant 0 : i32
    %c0_i32_0 = arith.constant 0 : i32
    %c0_i32_1 = arith.constant 0 : i32
    return %c0_i32, %c0_i32_0 : i32, i32
  }
  func.func @transform_2(%arg0: i32) -> (i32, i32) {
    %c0_i32 = arith.constant 0 : i32
    %c0_i32_0 = arith.constant 0 : i32
    %c0_i32_1 = arith.constant 0 : i32
    return %c0_i32, %c0_i32_0 : i32, i32
  }
  func.func @transform_3(%arg0: i32) -> (i32, i32) {
    %c0_i32 = arith.constant 0 : i32
    %c0_i32_0 = arith.constant 0 : i32
    %c0_i32_1 = arith.constant 0 : i32
    return %c0_i32, %c0_i32_0 : i32, i32
  }
  func.func @transform_4(%arg0: i32) -> (i32, i32) {
    %c0_i32 = arith.constant 0 : i32
    %c0_i32_0 = arith.constant 0 : i32
    %c0_i32_1 = arith.constant 0 : i32
    return %c0_i32, %c0_i32_0 : i32, i32
  }
  func.func @transform_5(%arg0: i32) -> (i32, i32) {
    %c0_i32 = arith.constant 0 : i32
    %c0_i32_0 = arith.constant 0 : i32
    %c0_i32_1 = arith.constant 0 : i32
    return %c0_i32, %c0_i32_0 : i32, i32
  }
  func.func @transform_6(%arg0: i32) -> (i32, i32) {
    %c0_i32 = arith.constant 0 : i32
    %c0_i32_0 = arith.constant 0 : i32
    %c0_i32_1 = arith.constant 0 : i32
    return %c0_i32, %c0_i32_0 : i32, i32
  }
  func.func @transform_7(%arg0: i32) -> (i32, i32) {
    %c0_i32 = arith.constant 0 : i32
    %c0_i32_0 = arith.constant 0 : i32
    return %arg0, %c0_i32 : i32, i32
  }
  func.func @transform_8(%arg0: i32) -> (i32, i32) {
    %c0_i32 = arith.constant 0 : i32
    %c0_i32_0 = arith.constant 0 : i32
    return %arg0, %c0_i32 : i32, i32
  }
  func.func @transform_9(%arg0: i32) -> (i32, i32) {
    %c0_i32 = arith.constant 0 : i32
    %c0_i32_0 = arith.constant 0 : i32
    return %arg0, %c0_i32 : i32, i32
  }
  func.func @transform_10(%arg0: i32) -> (i32, i32) {
    %c0_i32 = arith.constant 0 : i32
    %c0_i32_0 = arith.constant 0 : i32
    return %arg0, %c0_i32 : i32, i32
  }
}

</mosaic_0001>

<bundles_post_ra>
// kernel: tpu_custom_call.1
= control target key start
LH: loop header
LB: loop body
LE: loop exit
PB: predicated region body
PF: predicated region fallthrough
CT: control target
= control target key end

     0   :  { %s3314_s0 = inlined_call_operand.hbm [shape: f32[256,256], index: 0, kind: input, shape index: {}]   ;;  %s3315_s1 = inlined_call_operand.hbm [shape: f32[256,128], index: 1, kind: input, shape index: {}]   ;;  %s3316_s2 = inlined_call_operand.vmem [shape: f32[1,128], index: 2, kind: input, shape index: {}]   ;;  %s3317_s3 = inlined_call_operand.hbm [shape: f32[128,256], index: 3, kind: input, shape index: {}]   ;;  %s3318_s4 = inlined_call_operand.vmem [shape: f32[1,256], index: 4, kind: input, shape index: {}]   ;;  %s3319_s5 = inlined_call_operand.hbm [shape: f32[128,256], index: 5, kind: input, shape index: {}]   ;;  %s3320_s6 = inlined_call_operand.vmem [shape: f32[1,256], index: 6, kind: input, shape index: {}]   ;;  %s3321_s7 = inlined_call_operand.hbm [shape: f32[256,128], index: 7, kind: input, shape index: {}]   ;;  %s3322_s8 = inlined_call_operand.hbm [shape: f32[256,256], index: 8, kind: output, shape index: {0}]   ;;  %s3323_s9 = inlined_call_operand.hbm [shape: f32[256,128], index: 9, kind: output, shape index: {1}]   ;;  %s3324_s10 = inlined_call_operand.hbm [shape: f32[256,128], index: 10, kind: output, shape index: {2}]  }
   0x1   :  { %3347 = sst [smem:[#allocation27_spill]] %s3314_s0 }
   0x2   :  { %3348 = sst [smem:[#allocation28_spill]] %s3315_s1 }
   0x3   :  { %3349 = sst [smem:[#allocation29_spill]] %s3320_s6 }
   0x4   :  { %3350 = sst [smem:[#allocation30_spill]] %s3322_s8 }
   0x5   :  { %3351 = sst [smem:[#allocation31_spill]] %s3323_s9 }
   0x6   :  { %3352 = sst [smem:[#allocation32_spill]] %s3324_s10 }
   0x7   :  { %16 = vsyncpa [#allocation3], 0 }
   0x8   :  { %18 = vsyncpa [#allocation3 + $0x1], 0 }
   0x9   :  { %19 = vsyncpa [#allocation6], 0 }
   0xa   :  { %20 = vsyncpa [#allocation9], 0 }
   0xb   :  { %21 = vsyncpa [#allocation4], 0 }
   0xc   :  { %23 = vsyncpa [#allocation4 + $0x1], 0 }
   0xd   :  { %24 = vsyncpa [#allocation13], 0 }
   0xe   :  { %26 = vsyncpa [#allocation13 + $0x1], 0  ;;  %s2600_s13 = smov 0   ;;  %s2602_s14 = smov 0  }
   0xf   :  { %s2604_s15 = smov 0   ;;  %s2606_s16 = smov 0  }
  0x10 LB: > { %3353 = sst [smem:[#allocation21_spill]] %s2514_s13  ;;  %s2621_s17 = sadd.s32 4294967295, %s2526_s16   ;;  %s2526_s16 = sphi %s2606_s16, %s3392_s16   ;;  %s2522_s15 = sphi %s2604_s15, %s3394_s15   ;;  %s2518_s14 = sphi %s2602_s14, %s3396_s14   ;;  %s2514_s13 = sphi %s2600_s13, %s3395_s13  }
  0x11   : > { %3354 = sst [smem:[#allocation22_spill]] %s2522_s15  ;;  %s3325_s18 = sadd.s32 4294967294, %s2526_s16  }
  0x12   : > { %p52_p0 = scmp.ne.s32.totalorder %s2518_s14, %s2514_s13  ;;  %p3327_p1 = scmp.eq.s32.totalorder %s2621_s17, 0 }
  0x13   : > { %p234_p3 = scmp.eq.s32.totalorder %s3325_s18, 1  ;;  %p1718_p5 = scmp.ge.s32.totalorder %s2526_s16, 1 }
  0x14   : > { %p2632_p4 = por %p3327_p1, %p52_p0  ;;  %p293_p7 = scmp.lt.s32.totalorder %s2526_s16, 3 }
  0x15   : > { %p2637_p6 = por %p234_p3, %p52_p0  ;;  %s2528_s22 = smov [#allocation5]  }
  0x16   : > { %s3355_s19 = scalar_select %p2632_p4, 1, 0 }
  0x17   : > { %s3356_s20 = scalar_select %p2637_p6, 1, 0 }
  0x18   : > { %p2642_p8 = pnand %p1718_p5, %p293_p7  ;;  %s305_s23 = sshll.u32 %s2528_s22, 4  ;;  %s2646_s23 = int_to_ptr.vmem [resolvable:$true] %s305_s23 }
  0x19   : > { %3357 = sst [smem:[#allocation23_spill]] %s3356_s20  ;;  %s2658_s25 = sadd.s32 1, %s2526_s16  }
  0x1a   : > { %s3358_s21 = scalar_select %p2642_p8, 1, 0 }
  0x1b   : > { %p2005_p9 = pneg %p2642_p8  ;;  %3360 = sst [smem:[#allocation24_spill]] %s2658_s25 }
  0x1c   : > { %s39_s26 = sadd.s32 1, %s2522_s15  ;;  %s36_s27 = ssub.s32 %s2526_s16, %s2658_s25 }
  0x1d   : > { %p2653_p11 = pnand %p2005_p9, %p3327_p1  ;;  %s3361_s1 = sld [smem:[#allocation28_spill]] }
  0x1f   : > { %s3359_s24 = scalar_select %p2653_p11, 1, 0 }
  0x20   : > { %p2671_p13 = pneg %p2653_p11 }
  0x23   : > { %s2244_s30 = scalar_lea.hbm %s3361_s1, 4096 }
  0x24   : > { %p2245_p12 = scmp.ne.s32.totalorder %s3361_s1, %s2244_s30  ;;  %p2251_p5 = scmp.lt.u32.totalorder %s2244_s30, %s3361_s1 }
  0x26   : > { %p2247_p0 = pnand %p2671_p13, %p2245_p12 }
  0x28   : > { %p2248_p3 = pneg %p2247_p0 }
  0x2a   : > { %p2253_p7 = pnand %p2251_p5, %p2248_p3 }
  0x2c   : > { %2256 = shalt.err (!%p2253_p7)
}
  0x2d   : > { %s2257_s28 = scalar_lea.vmem %s2646_s23, 4096  ;;  %p2265_p2 = scmp.lt.s32.totalorder %s2646_s23, %s2646_s23 }
  0x2e   : > { %p2258_p9 = scmp.ne.s32.totalorder %s2646_s23, %s2257_s28  ;;  %p2266_p6 = scmp.lt.s32.totalorder %s2257_s28, %s2257_s28 }
  0x30   : > { %p2260_p10 = pnand %p2258_p9, %p2671_p13  ;;  %p2267_p12 = por %p2266_p6, %p2265_p2 }
  0x32   : > { %p2261_p1 = pneg %p2260_p10 }
  0x34   : > { %p2268_p0 = pnand %p2267_p12, %p2261_p1 }
  0x36   : > { %2271 = shalt.err (!%p2268_p0)
}
  0x37   : > { %s3333_s29 = smov 128   ;;  %s3334_s18 = smov 8  }
  0x38   : > { %2008 = dma.hbm_to_vmem [thread:$0]  (!%p2653_p11), %s3361_s1, 4096, %s2646_s23, [#allocation6], %s3333_s29, %s3333_s29, %s3334_s18  }
  0x39   : > { %p37_p1 = scmp.eq.s32.totalorder %s36_s27, 0  ;;  %p46_p2 = scmp.ne.s32.totalorder %s2522_s15, %s2518_s14 }
  0x3a   : > { %p47_p6 = scmp.eq.s32.totalorder %s2526_s16, 0  ;;  %p3364_p3 = scmp.eq.s32.totalorder %s2621_s17, 1 }
  0x3b   : > { %s2699_s11 = scalar_select %p37_p1, %s2522_s15, %s39_s26  }
  0x3c   : > { %p48_p10 = por %p47_p6, %p46_p2  ;;  %p2703_p5 = por %p3364_p3, %p46_p2 }
  0x3d   : > { %3363 = sst [smem:[#allocation25_spill]] %s2699_s11  ;;  %p2035_p7 = scmp.lt.s32.totalorder %s2526_s16, 2 }
  0x3e   : > { %s3365_s12 = scalar_select %p2703_p5, 1, 0 }
  0x3f   : > { %s354_s28 = sand.u32 1, %s2526_s16   ;;  %s356_s25 = sand.u32 1, %s2522_s15  }
  0x40   : > { %3366 = sst [smem:[#allocation26_spill]] %s3365_s12  ;;  %s1723_s13 = sshll.u32 %s356_s25, 8 }
  0x41   : > { %s1785_s8 = sshll.u32 %s2526_s16, 12  ;;  %s3367_s0 = sld [smem:[#allocation27_spill]] }
  0x42   : > { %s358_s26 = scalar_lea.vmem [#allocation2], %s1723_s13  ;;  %p2718_p9 = pnand %p2035_p7, %p48_p10 }
  0x43   : > { %s366_s27 = sshll.u32 %s358_s26, 4  ;;  %s2722_s30 = sshll.u32 %s356_s25, 7  ;;  %s2716_s27 = int_to_ptr.vmem [resolvable:$true] %s366_s27 }
  0x44   : > { %s3368_s20 = scalar_select %p2718_p9, 1, 0 }
  0x45   : > { %s2724_s29 = scalar_lea.sflag [#allocation3], %s354_s28  ;;  %p3342_p0 = pneg %p2718_p9 }
  0x47   : > { %s2714_s23 = scalar_lea.hbm %s3367_s0, %s1785_s8  ;;  %s2277_s13 = scalar_lea.hbm %s3367_s0, 8192 }
  0x48   : > { %s2272_s6 = scalar_lea.hbm %s2714_s23, 4096  ;;  %p2278_p6 = scmp.lt.u32.totalorder %s2714_s23, %s3367_s0 }
  0x49   : > { %p2273_p12 = scmp.ne.s32.totalorder %s2714_s23, %s2272_s6  ;;  %p2279_p10 = scmp.lt.u32.totalorder %s2277_s13, %s2272_s6 }
  0x4a   : > { %p2281_p7 = scmp.lt.u32.totalorder %s2272_s6, %s2714_s23 }
  0x4b   : > { %p2275_p1 = pnand %p3342_p0, %p2273_p12  ;;  %p2280_p3 = por %p2279_p10, %p2278_p6 }
  0x4d   : > { %p2276_p2 = pneg %p2275_p1  ;;  %p2282_p5 = por %p2281_p7, %p2280_p3 }
  0x4f   : > { %p2283_p4 = pnand %p2282_p5, %p2276_p2 }
  0x51   : > { %2286 = shalt.err (!%p2283_p4)
}
  0x52   : > { %s2287_s25 = scalar_lea.vmem %s2716_s27, 4096  ;;  %s2531_s28 = smov [#allocation2]  }
  0x53   : > { %p2288_p12 = scmp.ne.s32.totalorder %s2716_s27, %s2287_s25  ;;  %s2292_s8 = sshll.u32 %s2531_s28, 4  ;;  %s2293_s8 = int_to_ptr.vmem [resolvable:$false] %s2292_s8 }
  0x54   : > { %s2294_s18 = scalar_lea.vmem %s2293_s8, 8192  ;;  %p2295_p11 = scmp.lt.s32.totalorder %s2716_s27, %s2293_s8 }
  0x55   : > { %p2290_p1 = pnand %p2288_p12, %p3342_p0  ;;  %p2296_p6 = scmp.lt.s32.totalorder %s2294_s18, %s2287_s25 }
  0x57   : > { %p2291_p8 = pneg %p2290_p1  ;;  %p2297_p10 = por %p2296_p6, %p2295_p11 }
  0x59   : > { %p2298_p3 = pnand %p2297_p10, %p2291_p8 }
  0x5b   : > { %2301 = shalt.err (!%p2298_p3)
}
  0x5c   : > { %s2532_s6 = smov 256   ;;  %s2533_s10 = smov 16  }
  0x5d   : > { %2018 = dma.hbm_to_vmem [thread:$0]  (!%p2718_p9), %s2714_s23, 4096, %s2716_s27, %s2724_s29, %s2532_s6, %s2532_s6, %s2533_s10  }
  0x5e   : > { %s380_s13 = scalar_lea.vmem [#allocation10], %s2722_s30  ;;  %s2534_s25 = smov [#allocation7]  }
  0x5f   : > { %s2756_s26 = sshll.u32 %s380_s13, 4  ;;  %s321_s28 = sshll.u32 %s2534_s25, 4  ;;  %s322_s28 = int_to_ptr.vmem [resolvable:$true] %s321_s28  ;;  %s2807_s26 = int_to_ptr.vmem [resolvable:$true] %s2756_s26 }
  0x60   : > { %s2302_s0 = scalar_lea.hbm %s3317_s3, 4096 }
  0x61   : > { %p2303_p4 = scmp.ne.s32.totalorder %s3317_s3, %s2302_s0  ;;  %p2309_p5 = scmp.lt.u32.totalorder %s2302_s0, %s3317_s3 }
  0x63   : > { %p2305_p8 = pnand %p2303_p4, %p2671_p13 }
  0x65   : > { %p2306_p11 = pneg %p2305_p8 }
  0x67   : > { %p2311_p2 = pnand %p2309_p5, %p2306_p11 }
  0x69   : > { %2314 = shalt.err (!%p2311_p2)
}
  0x6a   : > { %s2315_s23 = scalar_lea.vmem %s322_s28, 4096  ;;  %p2323_p6 = scmp.lt.s32.totalorder %s322_s28, %s322_s28 }
  0x6b   : > { %p2316_p7 = scmp.ne.s32.totalorder %s322_s28, %s2315_s23  ;;  %p2324_p10 = scmp.lt.s32.totalorder %s2315_s23, %s2315_s23 }
  0x6d   : > { %p2318_p12 = pnand %p2316_p7, %p2671_p13  ;;  %p2325_p3 = por %p2324_p10, %p2323_p6 }
  0x6f   : > { %p2319_p1 = pneg %p2318_p12 }
  0x71   : > { %p2326_p0 = pnand %p2325_p3, %p2319_p1 }
  0x73   : > { %2329 = shalt.err (!%p2326_p0)
}
  0x74   : > { %p3369_p4 = scmp.ne.s32.totalorder %s3359_s24, 0  ;;  %s2535_s9 = smov [#allocation8]  }
  0x75   : > { %s337_s15 = sshll.u32 %s2535_s9, 4  ;;  %s1786_s11 = sshll.u32 %s2526_s16, 11  ;;  %s338_s15 = int_to_ptr.vmem [resolvable:$true] %s337_s15 }
  0x76   : > { %2011 = dma.hbm_to_vmem [thread:$0]  (!%p3369_p4), %s3317_s3, 4096, %s322_s28, [#allocation6], %s2532_s6, %s2532_s6, %s2533_s10  }
  0x77   : > { %s2783_s13 = scalar_lea.hbm %s3321_s7, %s1786_s11  ;;  %s2330_s18 = scalar_lea.hbm %s3319_s5, 4096 }
  0x78   : > { %p2331_p0 = scmp.ne.s32.totalorder %s3319_s5, %s2330_s18  ;;  %p2337_p5 = scmp.lt.u32.totalorder %s2330_s18, %s3319_s5 }
  0x7a   : > { %p2333_p8 = pnand %p2331_p0, %p2671_p13 }
  0x7c   : > { %p2334_p11 = pneg %p2333_p8 }
  0x7e   : > { %p2339_p2 = pnand %p2337_p5, %p2334_p11 }
  0x80   : > { %2342 = shalt.err (!%p2339_p2)
}
  0x81   : > { %s2343_s0 = scalar_lea.vmem %s338_s15, 4096  ;;  %p2351_p6 = scmp.lt.s32.totalorder %s338_s15, %s338_s15 }
  0x82   : > { %p2344_p7 = scmp.ne.s32.totalorder %s338_s15, %s2343_s0  ;;  %p2352_p10 = scmp.lt.s32.totalorder %s2343_s0, %s2343_s0 }
  0x84   : > { %p2346_p12 = pnand %p2344_p7, %p2671_p13  ;;  %p2353_p3 = por %p2352_p10, %p2351_p6 }
  0x86   : > { %p2347_p1 = pneg %p2346_p12 }
  0x88   : > { %p2354_p9 = pnand %p2353_p3, %p2347_p1 }
  0x8a   : > { %2357 = shalt.err (!%p2354_p9)
}
  0x8b   : > { %2014 = dma.hbm_to_vmem [thread:$0]  (!%p3369_p4), %s3319_s5, 4096, %s338_s15, [#allocation9], %s2532_s6, %s2532_s6, %s2533_s10  }
  0x8c   : > { %s2358_s22 = scalar_lea.hbm %s2783_s13, 2048  ;;  %p3370_p9 = scmp.ne.s32.totalorder %s3368_s20, 0 }
  0x8d   : > { %p2359_p13 = scmp.ne.s32.totalorder %s2783_s13, %s2358_s22  ;;  %s2363_s27 = scalar_lea.hbm %s3321_s7, 4096 }
  0x8e   : > { %p3371_p0 = pneg %p3370_p9  ;;  %p2364_p5 = scmp.lt.u32.totalorder %s2783_s13, %s3321_s7 }
  0x8f   : > { %p2365_p2 = scmp.lt.u32.totalorder %s2363_s27, %s2358_s22  ;;  %p2367_p12 = scmp.lt.u32.totalorder %s2358_s22, %s2783_s13 }
  0x90   : > { %p2361_p8 = pnand %p2359_p13, %p3371_p0 }
  0x91   : > { %p2366_p7 = por %p2365_p2, %p2364_p5 }
  0x92   : > { %p2362_p11 = pneg %p2361_p8 }
  0x93   : > { %p2368_p4 = por %p2367_p12, %p2366_p7 }
  0x95   : > { %p2369_p1 = pnand %p2368_p4, %p2362_p11 }
  0x97   : > { %2372 = shalt.err (!%p2369_p1)
}
  0x98   : > { %s2373_s6 = scalar_lea.vmem %s2807_s26, 2048  ;;  %p3372_p10 = pmov %p3371_p0 }
  0x99   : > { %p2374_p6 = scmp.ne.s32.totalorder %s2807_s26, %s2373_s6  ;;  %s2536_s10 = smov [#allocation10]  }
  0x9a   : > { %s2378_s15 = sshll.u32 %s2536_s10, 4  ;;  %s2379_s15 = int_to_ptr.vmem [resolvable:$false] %s2378_s15 }
  0x9b   : > { %p2376_p3 = pnand %p2374_p6, %p3372_p10  ;;  %s2380_s8 = scalar_lea.vmem %s2379_s15, 4096 }
  0x9c   : > { %p2381_p0 = scmp.lt.s32.totalorder %s2807_s26, %s2379_s15  ;;  %p2382_p8 = scmp.lt.s32.totalorder %s2380_s8, %s2373_s6 }
  0x9d   : > { %p2377_p13 = pneg %p2376_p3 }
  0x9e   : > { %p2383_p5 = por %p2382_p8, %p2381_p0 }
  0xa0   : > { %p2384_p2 = pnand %p2383_p5, %p2377_p13 }
  0xa2   : > { %2387 = shalt.err (!%p2384_p2)
}
  0xa3   : > { %s3373_s18 = smov 8   ;;  %s3374_s23 = smov 128  }
  0xa4   : > { %2021 = dma.hbm_to_vmem [thread:$0]  (!%p3370_p9), %s2783_s13, 2048, %s2807_s26, %s2724_s29, %s3374_s23, %s3374_s23, %s3373_s18  }
  0xa5   : > { %p3375_p11 = scmp.ne.s32.totalorder %s3358_s21, 0 }
  0xa6   : > { %s401_s28 = sand.u32 (!%p3375_p11), 1, %s2621_s17   ;;  %s2840_s1 = sand.u32 (!%p3375_p11), 1, %s2518_s14  }
  0xa7   : > { %399 = sbr.rel (%p3375_p11) target bundleno = 991 (0x3df), region = 52  ;;  %s1731_s20 = sshll.u32 (!%p3375_p11), %s2840_s1, 8 }
  0xa8   : > { %s402_s0 = scalar_lea.sflag (!%p3375_p11), [#allocation3], %s401_s28  ;;  %s2847_s12 = scalar_lea.vmem (!%p3375_p11), [#allocation2], %s1731_s20 }
  0xa9   : > { %p3376_p7 = scmp.ne.s32.totalorder (!%p3375_p11), %s3355_s19, 0 }
  0xae   : > { %2489 = dma.done.wait (%p3376_p7), %s402_s0, 4096  }
  0xaf   : > { %2491 = vsyncadd (%p3376_p7), %s402_s0, 4294963200  ;;  %p3377_p9 = scmp.eq.s32.totalorder %s2621_s17, 0 }
  0xb1   : > { %2493 = dma.done.wait (%p3377_p9), [#allocation6], 8192   ;;  %p3378_p12 = pmov %p3377_p9 }
  0xb2   : > { %p3379_p4 = pmov %p3377_p9 }
  0xb3   : > { %2495 = vsyncadd (%p3378_p12), [#allocation6], 4294959104 }
  0xb4   : > { %2497 = dma.done.wait (%p3379_p4), [#allocation9], 4096   ;;  %p3380_p1 = pmov %p3379_p4 }
  0xb5   : > { %s2862_s21 = sshll.u32 %s2840_s1, 7 }
  0xb6   : > { %2499 = vsyncadd (%p3380_p1), [#allocation9], 4294963200  ;;  %s2865_s29 = scalar_lea.vmem [#allocation10], %s2862_s21 }
  0xb7   : > { %2501 = dma.done.wait (%p3376_p7), %s402_s0, 2048  }
  0xb8   : > { %2503 = vsyncadd (%p3376_p7), %s402_s0, 4294965248  ;;  %v531_v0 = vld [vmem:[#allocation5 + $0x80] sm:$0xff]  ;;  %v532_v1 = vld [vmem:[#allocation5 + $0x88] sm:$0xff]  ;;  %s2965_s22 = scalar_lea.vmem [#allocation12], %s2862_s21  ;;  %s2969_s24 = scalar_lea.vmem [#allocation14], %s2862_s21 }
  0xb9   : > { %v515_v2 = vld [vmem:[#allocation5] sm:$0xff]  ;;  %v1871_v3 = vpack.c.bf16 %v532_v1, %v531_v0  ;;  %v516_v4 = vld [vmem:[#allocation5 + $0x8] sm:$0xff]  ;;  %v533_v5 = vld [vmem:[#allocation5 + $0x90] sm:$0xff]  ;;  %s3381_s11 = sld [smem:[#allocation26_spill]]  ;;  %s1789_s27 = sshll.u32 %s2621_s17, 11 }
  0xba   : > { %v534_v6 = vld [vmem:[#allocation5 + $0x98] sm:$0xff]  ;;  %v1873_v7 = vpack.c.bf16 %v516_v4, %v515_v2  ;;  %v517_v9 = vld [vmem:[#allocation5 + $0x10] sm:$0xff]  ;;  %v535_v11 = vld [vmem:[#allocation5 + $0xa0] sm:$0xff]  ;;  %s1518_s30 = sshll.u32 %s2965_s22, 4  ;;  %s3382_s10 = sld [smem:[#allocation31_spill]]  ;;  %s3116_s30 = int_to_ptr.vmem [resolvable:$true] %s1518_s30 }
  0xbb   : > { %v1875_v8 = vpack.c.bf16 %v534_v6, %v533_v5  ;;  %v518_v10 = vld [vmem:[#allocation5 + $0x18] sm:$0xff]  ;;  %1872 = vmatprep.subr.bf16.mxu0 %v1871_v3  ;;  %v536_v12 = vld [vmem:[#allocation5 + $0xa8] sm:$0xff]  ;;  %1967 = vmatprep.subr.bf16.mxu1 %v1871_v3  ;;  %v519_v15 = vld [vmem:[#allocation5 + $0x20] sm:$0xff]  ;;  %s3120_s8 = scalar_lea.sflag [#allocation13], %s401_s28  ;;  %s2388_s18 = scalar_lea.vmem %s3116_s30, 2048 }
  0xbc   : > { %1874 = vmatpush3.bf16.msra.mxu0 %v1873_v7  ;;  %v1877_v13 = vpack.c.bf16 %v518_v10, %v517_v9  ;;  %1975 = vmatpush3.bf16.msra.mxu1 %v1873_v7  ;;  %v1879_v14 = vpack.c.bf16 %v536_v12, %v535_v11  ;;  %v520_v16 = vld [vmem:[#allocation5 + $0x28] sm:$0xff]  ;;  %v537_v17 = vld [vmem:[#allocation5 + $0xb0] sm:$0xff]  ;;  %v538_v18 = vld [vmem:[#allocation5 + $0xb8] sm:$0xff]  ;;  %p2389_p6 = scmp.ne.s32.totalorder %s3116_s30, %s2388_s18  ;;  %s2538_s23 = smov [#allocation12]  }
  0xbd   : > { %1876 = vmatprep.subr.bf16.mxu0 %v1875_v8  ;;  %1968 = vmatprep.subr.bf16.mxu1 %v1875_v8  ;;  %v1881_v19 = vpack.c.bf16 %v520_v16, %v519_v15  ;;  %v1883_v20 = vpack.c.bf16 %v538_v18, %v537_v17  ;;  %v521_v21 = vld [vmem:[#allocation5 + $0x30] sm:$0xff]  ;;  %v522_v22 = vld [vmem:[#allocation5 + $0x38] sm:$0xff]  ;;  %v539_v23 = vld [vmem:[#allocation5 + $0xc0] sm:$0xff]  ;;  %s2392_s0 = sshll.u32 %s2538_s23, 4  ;;  %s2393_s0 = int_to_ptr.vmem [resolvable:$false] %s2392_s0 }
  0xbe   : > { %v540_v24 = vld [vmem:[#allocation5 + $0xc8] sm:$0xff]  ;;  %v1885_v26 = vpack.c.bf16 %v522_v22, %v521_v21  ;;  %v523_v28 = vld [vmem:[#allocation5 + $0x40] sm:$0xff]  ;;  %v541_v30 = vld [vmem:[#allocation5 + $0xd0] sm:$0xff]  ;;  %p2395_p0 = scmp.lt.s32.totalorder %s3116_s30, %s2393_s0 }
  0xbf   : > { %v484_v25 = vld [vmem:[%s2847_s12 + $0x8] sm:$0xff]  ;;  %v1887_v27 = vpack.c.bf16 %v540_v24, %v539_v23  ;;  %v542_v31 = vld [vmem:[#allocation5 + $0xd8] sm:$0xff]  ;;  %v525_v35 = vld [vmem:[#allocation5 + $0x50] sm:$0xff]  ;;  %p3383_p10 = scmp.ne.s32.totalorder %s3381_s11, 0 }
  0xc0   : > { %1878 = vmatpush3.bf16.msra.mxu0 %v1877_v13  ;;  %1976 = vmatpush3.bf16.msra.mxu1 %v1877_v13  ;;  %v524_v29 = vld [vmem:[#allocation5 + $0x48] sm:$0xff]  ;;  %v1891_v34 = vpack.c.bf16 %v542_v31, %v541_v30  ;;  %v526_v36 = vld [vmem:[#allocation5 + $0x58] sm:$0xff]  ;;  %v543_v37 = vld [vmem:[#allocation5 + $0xe0] sm:$0xff]  ;;  %s3114_s15 = scalar_lea.hbm %s3382_s10, %s1789_s27 }
  0xc1   : > { %1880 = vmatprep.subr.bf16.mxu0 %v1879_v14  ;;  %1969 = vmatprep.subr.bf16.mxu1 %v1879_v14  ;;  %v1889_v32 = vpack.c.bf16 %v524_v29, %v523_v28  ;;  %v500_v33 = vld [vmem:[%s2847_s12 + $0x88] sm:$0xff]  ;;  %v1893_v39 = vpack.c.bf16 %v526_v36, %v525_v35  ;;  %v527_v41 = vld [vmem:[#allocation5 + $0x60] sm:$0xff]  ;;  %v545_v43 = vld [vmem:[#allocation5 + $0xf0] sm:$0xff]  ;;  %p2390_p3 = pnand %p2389_p6, %p3383_p10 }
  0xc2   : > { %618 = vmatprep.mubr.f32.mxu0 %v484_v25  ;;  %v544_v38 = vld [vmem:[#allocation5 + $0xe8] sm:$0xff]  ;;  %658 = vmatprep.mubr.f32.mxu1 %v500_v33  ;;  %v546_v44 = vld [vmem:[#allocation5 + $0xf8] sm:$0xff]  ;;  %v529_v47 = vld [vmem:[#allocation5 + $0x70] sm:$0xff] }
  0xc3   : > { %v1895_v40 = vpack.c.bf16 %v544_v38, %v543_v37  ;;  %v528_v42 = vld [vmem:[#allocation5 + $0x68] sm:$0xff]  ;;  %v1899_v46 = vpack.c.bf16 %v546_v44, %v545_v43  ;;  %v530_v48 = vld [vmem:[#allocation5 + $0x78] sm:$0xff]  ;;  %v715_v53 = vld [vmem:[#allocation7] sm:$0xff]  ;;  %p2391_p13 = pneg %p2390_p3 }
  0xc4   : > { %1882 = vmatpush3.bf16.msra.mxu0 %v1881_v19  ;;  %1977 = vmatpush3.bf16.msra.mxu1 %v1881_v19  ;;  %v1897_v45 = vpack.c.bf16 %v528_v42, %v527_v41  ;;  %v716_v49 = vld [vmem:[#allocation7 + $0x8] sm:$0xff]  ;;  %v718_v50 = vld [vmem:[#allocation7 + $0x18] sm:$0xff]  ;;  %v1901_v51 = vpack.c.bf16 %v530_v48, %v529_v47  ;;  %v717_v54 = vld [vmem:[#allocation7 + $0x10] sm:$0xff] }
  0xc5   : > { %1884 = vmatprep.subr.bf16.mxu0 %v1883_v20  ;;  %1970 = vmatprep.subr.bf16.mxu1 %v1883_v20  ;;  %v1903_v52 = vpack.c.bf16 %v718_v50, %v716_v49  ;;  %v720_v55 = vld [vmem:[#allocation7 + $0x28] sm:$0xff]  ;;  %v722_v56 = vld [vmem:[#allocation7 + $0x38] sm:$0xff]  ;;  %v483_v57 = vld [vmem:[%s2847_s12] sm:$0xff]  ;;  %v1905_v61 = vpack.c.bf16 %v717_v54, %v715_v53 }
  0xc6   : > { %v499_v58 = vld [vmem:[%s2847_s12 + $0x80] sm:$0xff]  ;;  %v486_v59 = vld [vmem:[%s2847_s12 + $0x18] sm:$0xff]  ;;  %v1907_v62 = vpack.c.bf16 %v722_v56, %v720_v55  ;;  %v721_v0 = vld [vmem:[#allocation7 + $0x30] sm:$0xff] }
  0xc7   : > { %v502_v60 = vld [vmem:[%s2847_s12 + $0x98] sm:$0xff]  ;;  %v719_v63 = vld [vmem:[#allocation7 + $0x20] sm:$0xff]  ;;  %v724_v1 = vld [vmem:[#allocation7 + $0x48] sm:$0xff] }
  0xc8   : > { %1886 = vmatpush3.bf16.msra.mxu0 %v1885_v26  ;;  %1978 = vmatpush3.bf16.msra.mxu1 %v1885_v26  ;;  %v726_v2 = vld [vmem:[#allocation7 + $0x58] sm:$0xff]  ;;  %v485_v3 = vld [vmem:[%s2847_s12 + $0x10] sm:$0xff]  ;;  %v488_v5 = vld [vmem:[%s2847_s12 + $0x28] sm:$0xff]  ;;  %v1909_v7 = vpack.c.bf16 %v721_v0, %v719_v63  ;;  %v2537_v0 = vmov 0.0  }
  0xc9   : > { %1888 = vmatprep.subr.bf16.mxu0 %v1887_v27  ;;  %1971 = vmatprep.subr.bf16.mxu1 %v1887_v27  ;;  %v501_v4 = vld [vmem:[%s2847_s12 + $0x90] sm:$0xff]  ;;  %v504_v6 = vld [vmem:[%s2847_s12 + $0xa8] sm:$0xff]  ;;  %v1911_v8 = vpack.c.bf16 %v726_v2, %v724_v1  ;;  %v723_v9 = vld [vmem:[#allocation7 + $0x40] sm:$0xff] }
  0xca   : > { %v725_v10 = vld [vmem:[#allocation7 + $0x50] sm:$0xff]  ;;  %v728_v11 = vld [vmem:[#allocation7 + $0x68] sm:$0xff]  ;;  %v730_v12 = vld [vmem:[#allocation7 + $0x78] sm:$0xff] }
  0xcb   : > { %v487_v13 = vld [vmem:[%s2847_s12 + $0x20] sm:$0xff]  ;;  %v490_v15 = vld [vmem:[%s2847_s12 + $0x38] sm:$0xff]  ;;  %v1913_v17 = vpack.c.bf16 %v725_v10, %v723_v9  ;;  %v1915_v18 = vpack.c.bf16 %v730_v12, %v728_v11  ;;  %v729_v20 = vld [vmem:[#allocation7 + $0x70] sm:$0xff] }
  0xcc   : > { %1890 = vmatpush3.bf16.msra.mxu0 %v1889_v32  ;;  %1979 = vmatpush3.bf16.msra.mxu1 %v1889_v32  ;;  %v503_v14 = vld [vmem:[%s2847_s12 + $0xa0] sm:$0xff]  ;;  %v506_v16 = vld [vmem:[%s2847_s12 + $0xb8] sm:$0xff]  ;;  %v732_v21 = vld [vmem:[#allocation7 + $0x88] sm:$0xff] }
  0xcd   : > { %1892 = vmatprep.subr.bf16.mxu0 %v1891_v34  ;;  %1972 = vmatprep.subr.bf16.mxu1 %v1891_v34  ;;  %v727_v19 = vld [vmem:[#allocation7 + $0x60] sm:$0xff]  ;;  %v734_v22 = vld [vmem:[#allocation7 + $0x98] sm:$0xff]  ;;  %v489_v23 = vld [vmem:[%s2847_s12 + $0x30] sm:$0xff] }
  0xce   : > { %v505_v24 = vld [vmem:[%s2847_s12 + $0xb0] sm:$0xff]  ;;  %v492_v25 = vld [vmem:[%s2847_s12 + $0x48] sm:$0xff]  ;;  %v1917_v27 = vpack.c.bf16 %v729_v20, %v727_v19  ;;  %v1919_v28 = vpack.c.bf16 %v734_v22, %v732_v21  ;;  %v731_v29 = vld [vmem:[#allocation7 + $0x80] sm:$0xff] }
  0xcf   : > { %v508_v26 = vld [vmem:[%s2847_s12 + $0xc8] sm:$0xff]  ;;  %v733_v30 = vld [vmem:[#allocation7 + $0x90] sm:$0xff]  ;;  %v738_v32 = vld [vmem:[#allocation7 + $0xb8] sm:$0xff] }
  0xd0   : > { %1894 = vmatpush3.bf16.msra.mxu0 %v1893_v39  ;;  %1980 = vmatpush3.bf16.msra.mxu1 %v1893_v39  ;;  %v736_v31 = vld [vmem:[#allocation7 + $0xa8] sm:$0xff]  ;;  %v491_v33 = vld [vmem:[%s2847_s12 + $0x40] sm:$0xff]  ;;  %v494_v35 = vld [vmem:[%s2847_s12 + $0x58] sm:$0xff]  ;;  %v1921_v37 = vpack.c.bf16 %v733_v30, %v731_v29 }
  0xd1   : > { %1896 = vmatprep.subr.bf16.mxu0 %v1895_v40  ;;  %1973 = vmatprep.subr.bf16.mxu1 %v1895_v40  ;;  %v507_v34 = vld [vmem:[%s2847_s12 + $0xc0] sm:$0xff]  ;;  %v510_v36 = vld [vmem:[%s2847_s12 + $0xd8] sm:$0xff]  ;;  %v1923_v38 = vpack.c.bf16 %v738_v32, %v736_v31  ;;  %v737_v40 = vld [vmem:[#allocation7 + $0xb0] sm:$0xff] }
  0xd2   : > { %v735_v39 = vld [vmem:[#allocation7 + $0xa0] sm:$0xff]  ;;  %v740_v41 = vld [vmem:[#allocation7 + $0xc8] sm:$0xff]  ;;  %v742_v42 = vld [vmem:[#allocation7 + $0xd8] sm:$0xff] }
  0xd3   : > { %v493_v43 = vld [vmem:[%s2847_s12 + $0x50] sm:$0xff]  ;;  %v1925_v47 = vpack.c.bf16 %v737_v40, %v735_v39  ;;  %v1927_v48 = vpack.c.bf16 %v742_v42, %v740_v41  ;;  %v495_v49 = vld [vmem:[%s2847_s12 + $0x60] sm:$0xff]  ;;  %v1017_v1 = vld [vmem:[#allocation8 + $0x8] sm:$0xff] }
  0xd4   : > { %1898 = vmatpush3.bf16.msra.mxu0 %v1897_v45  ;;  %1981 = vmatpush3.bf16.msra.mxu1 %v1897_v45  ;;  %v509_v44 = vld [vmem:[%s2847_s12 + $0xd0] sm:$0xff]  ;;  %v496_v45 = vld [vmem:[%s2847_s12 + $0x68] sm:$0xff]  ;;  %v511_v50 = vld [vmem:[%s2847_s12 + $0xe0] sm:$0xff] }
  0xd5   : > { %1900 = vmatprep.subr.bf16.mxu0 %v1899_v46  ;;  %1974 = vmatprep.subr.bf16.mxu1 %v1899_v46  ;;  %v512_v46 = vld [vmem:[%s2847_s12 + $0xe8] sm:$0xff]  ;;  %v497_v53 = vld [vmem:[%s2847_s12 + $0x70] sm:$0xff]  ;;  %v739_v55 = vld [vmem:[#allocation7 + $0xc0] sm:$0xff] }
  0xd6   : > { %v513_v54 = vld [vmem:[%s2847_s12 + $0xf0] sm:$0xff]  ;;  %v1019_v2 = vld [vmem:[#allocation8 + $0x18] sm:$0xff]  ;;  %v1020_v10 = vld [vmem:[#allocation8 + $0x20] sm:$0xff] }
  0xd7   : > { %v741_v56 = vld [vmem:[#allocation7 + $0xd0] sm:$0xff]  ;;  %v1025_v12 = vld [vmem:[#allocation8 + $0x48] sm:$0xff]  ;;  %v2908_v21 = vld [vmem:[%s3316_s2] ss:$0 sm:$0xff] }
  0xd8   : > { %1902 = vmatpush3.bf16.msra.mxu0 %v1901_v51  ;;  %1982 = vmatpush3.bf16.msra.mxu1 %v1901_v51  ;;  %v498_v51 = vld [vmem:[%s2847_s12 + $0x78] sm:$0xff]  ;;  %v1022_v11 = vld [vmem:[#allocation8 + $0x30] sm:$0xff] }
  0xd9   : > { %1904 = vmatprep.subr.bf16.mxu1 %v1903_v52  ;;  %v514_v52 = vld [vmem:[%s2847_s12 + $0xf8] sm:$0xff]  ;;  %s2394_s12 = scalar_lea.vmem %s2393_s0, 4096 }
  0xda   : > { %p2396_p8 = scmp.lt.s32.totalorder %s2394_s12, %s2388_s18 }
  0xdb   : > { %619 = vmatmul.mubr.f32.vlgmr.msra.gmra.mrb[0].mxu0 %v483_v57  ;;  %659 = vmatmul.mubr.f32.vlgmr.msra.gmra.mrb[0].mxu1 %v499_v58  ;;  %v1929_v57 = vpack.c.bf16 %v741_v56, %v739_v55  ;;  %v744_v58 = vld [vmem:[#allocation7 + $0xe8] sm:$0xff] }
  0xdc   : > { %623 = vmatprep.mubr.f32.mxu0 %v486_v59  ;;  %663 = vmatprep.mubr.f32.mxu1 %v502_v60  ;;  %v746_v59 = vld [vmem:[#allocation7 + $0xf8] sm:$0xff]  ;;  %p2397_p5 = por %p2396_p8, %p2395_p0 }
  0xdd   : > { %1906 = vmatpush1.bf16.msra.mxu1 %v1905_v61  ;;  %v1931_v60 = vpack.c.bf16 %v746_v59, %v744_v58  ;;  %v743_v61 = vld [vmem:[#allocation7 + $0xe0] sm:$0xff] }
  0xde   : > { %1908 = vmatprep.subr.bf16.mxu1 %v1907_v62  ;;  %v745_v62 = vld [vmem:[#allocation7 + $0xf0] sm:$0xff]  ;;  %p2398_p2 = pnand %p2397_p5, %p2391_p13 }
  0xdf   : > { %624 = vmatmul.mubr.f32.gmra.mrb[2].mxu0 %v485_v3  ;;  %664 = vmatmul.mubr.f32.gmra.mrb[2].mxu1 %v501_v4  ;;  %v1933_v63 = vpack.c.bf16 %v745_v62, %v743_v61  ;;  %v1016_v3 = vld [vmem:[#allocation8] sm:$0xff]  ;;  %v1935_v4 = vpack.c.bf16 %v1019_v2, %v1017_v1 }
  0xe0   : > { %628 = vmatprep.mubr.f32.mxu0 %v488_v5  ;;  %668 = vmatprep.mubr.f32.mxu1 %v504_v6  ;;  %v1018_v5 = vld [vmem:[#allocation8 + $0x10] sm:$0xff]  ;;  %v1021_v6 = vld [vmem:[#allocation8 + $0x28] sm:$0xff] }
  0xe1   : > { %1910 = vmatpush1.bf16.msra.mxu1 %v1909_v7  ;;  %v1023_v7 = vld [vmem:[#allocation8 + $0x38] sm:$0xff]  ;;  %1936 = vmatprep.subr.bf16.mxu0 %v1935_v4 }
  0xe2   : > { %1912 = vmatprep.subr.bf16.mxu1 %v1911_v8  ;;  %v1937_v8 = vpack.c.bf16 %v1018_v5, %v1016_v3  ;;  %v1939_v9 = vpack.c.bf16 %v1023_v7, %v1021_v6 }
  0xe3   : > { %629 = vmatmul.mubr.f32.gmra.mrb[4].mxu0 %v487_v13  ;;  %669 = vmatmul.mubr.f32.gmra.mrb[4].mxu1 %v503_v14  ;;  %v1027_v13 = vld [vmem:[#allocation8 + $0x58] sm:$0xff]  ;;  %v1941_v14 = vpack.c.bf16 %v1022_v11, %v1020_v10 }
  0xe4   : > { %633 = vmatprep.mubr.f32.mxu0 %v490_v15  ;;  %673 = vmatprep.mubr.f32.mxu1 %v506_v16  ;;  %v1943_v15 = vpack.c.bf16 %v1027_v13, %v1025_v12  ;;  %v1024_v16 = vld [vmem:[#allocation8 + $0x40] sm:$0xff] }
  0xe5   : > { %1914 = vmatpush1.bf16.msra.mxu1 %v1913_v17  ;;  %1938 = vmatpush1.bf16.msra.mxu0 %v1937_v8  ;;  %v1026_v17 = vld [vmem:[#allocation8 + $0x50] sm:$0xff] }
  0xe6   : > { %1916 = vmatprep.subr.bf16.mxu1 %v1915_v18  ;;  %1940 = vmatprep.subr.bf16.mxu0 %v1939_v9  ;;  %v1945_v18 = vpack.c.bf16 %v1026_v17, %v1024_v16 }
  0xe7   : > { %634 = vmatmul.mubr.f32.gmra.mrb[6].mxu0 %v489_v23  ;;  %674 = vmatmul.mubr.f32.gmra.mrb[6].mxu1 %v505_v24 }
  0xe8   : > { %638 = vmatprep.mubr.f32.mxu0 %v492_v25  ;;  %678 = vmatprep.mubr.f32.mxu1 %v508_v26 }
  0xe9   : > { %1918 = vmatpush1.bf16.msra.mxu1 %v1917_v27  ;;  %1942 = vmatpush1.bf16.msra.mxu0 %v1941_v14 }
  0xea   : > { %1920 = vmatprep.subr.bf16.mxu1 %v1919_v28  ;;  %1944 = vmatprep.subr.bf16.mxu0 %v1943_v15 }
  0xeb   : > { %639 = vmatmul.mubr.f32.gmra.mrb[8].mxu0 %v491_v33  ;;  %679 = vmatmul.mubr.f32.gmra.mrb[8].mxu1 %v507_v34 }
  0xec   : > { %643 = vmatprep.mubr.f32.mxu0 %v494_v35  ;;  %683 = vmatprep.mubr.f32.mxu1 %v510_v36 }
  0xed   : > { %1922 = vmatpush1.bf16.msra.mxu1 %v1921_v37  ;;  %1946 = vmatpush1.bf16.msra.mxu0 %v1945_v18 }
  0xee   : > { %1924 = vmatprep.subr.bf16.mxu1 %v1923_v38 }
  0xef   : > { %644 = vmatmul.mubr.f32.gmra.mrb[10].mxu0 %v493_v43  ;;  %684 = vmatmul.mubr.f32.gmra.mrb[10].mxu1 %v509_v44 }
  0xf0   : > { %648 = vmatprep.mubr.f32.mxu0 %v496_v45  ;;  %688 = vmatprep.mubr.f32.mxu1 %v512_v46 }
  0xf1   : > { %1926 = vmatpush1.bf16.msra.mxu1 %v1925_v47 }
  0xf2   : > { %1928 = vmatprep.subr.bf16.mxu1 %v1927_v48 }
  0xf3   : > { %649 = vmatmul.mubr.f32.gmra.mrb[12].mxu0 %v495_v49  ;;  %689 = vmatmul.mubr.f32.gmra.mrb[12].mxu1 %v511_v50 }
  0xf4   : > { %653 = vmatprep.mubr.f32.mxu0 %v498_v51  ;;  %693 = vmatprep.mubr.f32.mxu1 %v514_v52 }
  0xf5   : > { %1930 = vmatpush1.bf16.msra.mxu1 %v1929_v57 }
  0xf6   : > { %1932 = vmatprep.subr.bf16.mxu1 %v1931_v60 }
  0xf7   : > { %654 = vmatmul.mubr.f32.gmra.mrb[14].mxu0 %v497_v53  ;;  %694 = vmatmul.mubr.f32.gmra.mrb[14].mxu1 %v513_v54 }
  0xf8   : > { %823 = vmatprep.mubr.f32.mxu1 %v2537_v0  ;;  %1124 = vmatprep.mubr.f32.mxu0 %v2537_v0 }
  0xf9   : > { %1934 = vmatpush1.bf16.msra.mxu1 %v1933_v63 }
 0x1ae   : > { %v1823_v19 = vpop.f32.mrb[0].mxu0  ;;  %v1847_v20 = vpop.f32.mrb[0].mxu1 }
 0x1af   : > { %v1824_v22 = vpop.f32.mrb[1].mxu0  ;;  %v1848_v23 = vpop.f32.mrb[1].mxu1 }
 0x1b0   : > { %v1825_v24 = vadd.f32 %v1824_v22, %v1823_v19  ;;  %v2910_v25 = vadd.f32 %v1848_v23, %v1847_v20 }
 0x1b2   : > { %v621_v26 = vadd.f32 %v1825_v24, %v2908_v21  ;;  %v1826_v27 = vpop.f32.mrb[2].mxu0  ;;  %v1850_v28 = vpop.f32.mrb[2].mxu1  ;;  %v661_v20 = vadd.f32 %v2910_v25, %v2908_v21 }
 0x1b3   : > { %v1827_v29 = vpop.f32.mrb[3].mxu0  ;;  %v1851_v30 = vpop.f32.mrb[3].mxu1 }
 0x1b4   : > { %v699_v31 = vmax.f32 %v621_v26, 0.0  ;;  %v1828_v32 = vadd.f32 %v1827_v29, %v1826_v27  ;;  %v2913_v33 = vadd.f32 %v1851_v30, %v1850_v28  ;;  %v707_v23 = vmax.f32 %v661_v20, 0.0 }
 0x1b6   : > { %v626_v34 = vadd.f32 %v1828_v32, %v2908_v21  ;;  %v1829_v35 = vpop.f32.mrb[4].mxu0  ;;  %824 = vmatmul.mubr.f32.vlgmr.msra.gmra.mrb[16].mxu1 %v699_v31  ;;  %v1853_v36 = vpop.f32.mrb[4].mxu1  ;;  %v666_v24 = vadd.f32 %v2913_v33, %v2908_v21 }
 0x1b7   : > { %v1830_v37 = vpop.f32.mrb[5].mxu0  ;;  %829 = vmatprep.mubr.f32.mxu1 %v2537_v0  ;;  %v1854_v38 = vpop.f32.mrb[5].mxu1 }
 0x1b8   : > { %v700_v39 = vmax.f32 %v626_v34, 0.0  ;;  %v1831_v40 = vadd.f32 %v1830_v37, %v1829_v35  ;;  %v1855_v41 = vadd.f32 %v1854_v38, %v1853_v36  ;;  %v708_v26 = vmax.f32 %v666_v24, 0.0  ;;  %v1029_v38 = vld [vmem:[#allocation8 + $0x68] sm:$0xff] }
 0x1ba   : > { %v631_v42 = vadd.f32 %v1831_v40, %v2908_v21  ;;  %v1832_v43 = vpop.f32.mrb[6].mxu0  ;;  %830 = vmatmul.mubr.f32.gmra.mrb[18].mxu1 %v700_v39  ;;  %v1856_v44 = vpop.f32.mrb[6].mxu1  ;;  %v671_v27 = vadd.f32 %v1855_v41, %v2908_v21  ;;  %v1031_v39 = vld [vmem:[#allocation8 + $0x78] sm:$0xff]  ;;  %v1028_v41 = vld [vmem:[#allocation8 + $0x60] sm:$0xff] }
 0x1bb   : > { %v1833_v45 = vpop.f32.mrb[7].mxu0  ;;  %835 = vmatprep.mubr.f32.mxu1 %v2537_v0  ;;  %v1857_v46 = vpop.f32.mrb[7].mxu1  ;;  %v1947_v40 = vpack.c.bf16 %v1031_v39, %v1029_v38 }
 0x1bc   : > { %v701_v47 = vmax.f32 %v631_v42, 0.0  ;;  %v1834_v48 = vadd.f32 %v1833_v45, %v1832_v43  ;;  %v1858_v49 = vadd.f32 %v1857_v46, %v1856_v44  ;;  %v709_v28 = vmax.f32 %v671_v27, 0.0  ;;  %v1030_v42 = vld [vmem:[#allocation8 + $0x70] sm:$0xff]  ;;  %v1033_v44 = vld [vmem:[#allocation8 + $0x88] sm:$0xff]  ;;  %v1035_v45 = vld [vmem:[#allocation8 + $0x98] sm:$0xff] }
 0x1bd   : > { %v1949_v43 = vpack.c.bf16 %v1030_v42, %v1028_v41  ;;  %1948 = vmatprep.subr.bf16.mxu0 %v1947_v40  ;;  %v1951_v46 = vpack.c.bf16 %v1035_v45, %v1033_v44  ;;  %v969_v45 = vld [vmem:[%s2865_s29 + $0x8] sm:$0xff] }
 0x1be   : > { %v636_v50 = vadd.f32 %v1834_v48, %v2908_v21  ;;  %v1835_v51 = vpop.f32.mrb[8].mxu0  ;;  %836 = vmatmul.mubr.f32.gmra.mrb[20].mxu1 %v701_v47  ;;  %v1859_v52 = vpop.f32.mrb[8].mxu1  ;;  %v676_v25 = vadd.f32 %v1858_v49, %v2908_v21  ;;  %v1034_v47 = vld [vmem:[#allocation8 + $0x90] sm:$0xff]  ;;  %v1037_v49 = vld [vmem:[#allocation8 + $0xa8] sm:$0xff] }
 0x1bf   : > { %v1836_v53 = vpop.f32.mrb[9].mxu0  ;;  %841 = vmatprep.mubr.f32.mxu1 %v2537_v0  ;;  %v1860_v54 = vpop.f32.mrb[9].mxu1  ;;  %1950 = vmatpush1.bf16.msra.mxu0 %v1949_v43 }
 0x1c0   : > { %v702_v55 = vmax.f32 %v636_v50, 0.0  ;;  %v1837_v56 = vadd.f32 %v1836_v53, %v1835_v51  ;;  %v1861_v57 = vadd.f32 %v1860_v54, %v1859_v52  ;;  %v710_v29 = vmax.f32 %v676_v25, 0.0  ;;  %1952 = vmatprep.subr.bf16.mxu0 %v1951_v46  ;;  %v1039_v50 = vld [vmem:[#allocation8 + $0xb8] sm:$0xff]  ;;  %v1036_v52 = vld [vmem:[#allocation8 + $0xa0] sm:$0xff]  ;;  %v1038_v53 = vld [vmem:[#allocation8 + $0xb0] sm:$0xff] }
 0x1c1   : > { %v1955_v51 = vpack.c.bf16 %v1039_v50, %v1037_v49  ;;  %v1957_v54 = vpack.c.bf16 %v1038_v53, %v1036_v52 }
 0x1c2   : > { %v641_v58 = vadd.f32 %v1837_v56, %v2908_v21  ;;  %v1838_v59 = vpop.f32.mrb[10].mxu0  ;;  %842 = vmatmul.mubr.f32.gmra.mrb[22].mxu1 %v702_v55  ;;  %v1862_v60 = vpop.f32.mrb[10].mxu1  ;;  %v681_v30 = vadd.f32 %v1861_v57, %v2908_v21  ;;  %v1041_v55 = vld [vmem:[#allocation8 + $0xc8] sm:$0xff]  ;;  %v1043_v56 = vld [vmem:[#allocation8 + $0xd8] sm:$0xff] }
 0x1c3   : > { %v1839_v61 = vpop.f32.mrb[11].mxu0  ;;  %847 = vmatprep.mubr.f32.mxu1 %v2537_v0  ;;  %v1863_v62 = vpop.f32.mrb[11].mxu1  ;;  %v1959_v57 = vpack.c.bf16 %v1043_v56, %v1041_v55 }
 0x1c4   : > { %v703_v63 = vmax.f32 %v641_v58, 0.0  ;;  %v1840_v1 = vadd.f32 %v1839_v61, %v1838_v59  ;;  %v1864_v2 = vadd.f32 %v1863_v62, %v1862_v60  ;;  %v711_v31 = vmax.f32 %v681_v30, 0.0  ;;  %v1040_v58 = vld [vmem:[#allocation8 + $0xc0] sm:$0xff]  ;;  %v1042_v59 = vld [vmem:[#allocation8 + $0xd0] sm:$0xff]  ;;  %v1045_v61 = vld [vmem:[#allocation8 + $0xe8] sm:$0xff] }
 0x1c5   : > { %v1961_v60 = vpack.c.bf16 %v1042_v59, %v1040_v58  ;;  %v1047_v62 = vld [vmem:[#allocation8 + $0xf8] sm:$0xff] }
 0x1c6   : > { %v646_v3 = vadd.f32 %v1840_v1, %v2908_v21  ;;  %v1841_v4 = vpop.f32.mrb[12].mxu0  ;;  %848 = vmatmul.mubr.f32.gmra.mrb[24].mxu1 %v703_v63  ;;  %v1865_v5 = vpop.f32.mrb[12].mxu1  ;;  %v686_v32 = vadd.f32 %v1864_v2, %v2908_v21  ;;  %v1963_v63 = vpack.c.bf16 %v1047_v62, %v1045_v61  ;;  %v1044_v1 = vld [vmem:[#allocation8 + $0xe0] sm:$0xff]  ;;  %v1046_v2 = vld [vmem:[#allocation8 + $0xf0] sm:$0xff] }
 0x1c7   : > { %v1842_v6 = vpop.f32.mrb[13].mxu0  ;;  %853 = vmatprep.mubr.f32.mxu1 %v2537_v0  ;;  %v1866_v7 = vpop.f32.mrb[13].mxu1 }
 0x1c8   : > { %v704_v8 = vmax.f32 %v646_v3, 0.0  ;;  %v1843_v9 = vadd.f32 %v1842_v6, %v1841_v4  ;;  %v1867_v10 = vadd.f32 %v1866_v7, %v1865_v5  ;;  %v712_v33 = vmax.f32 %v686_v32, 0.0  ;;  %v747_v7 = vld [vmem:[%s3318_s4] sm:$0x3] }
 0x1c9   : > { %v1965_v3 = vpack.c.bf16 %v1046_v2, %v1044_v1  ;;  %v749_v4 = vlaneseq  ;;  %v971_v1 = vld [vmem:[%s2865_s29 + $0x18] sm:$0xff] }
 0x1ca   : > { %v651_v11 = vadd.f32 %v1843_v9, %v2908_v21  ;;  %v1844_v12 = vpop.f32.mrb[14].mxu0  ;;  %854 = vmatmul.mubr.f32.gmra.mrb[26].mxu1 %v704_v8  ;;  %v1868_v13 = vpop.f32.mrb[14].mxu1  ;;  %v691_v34 = vadd.f32 %v1867_v10, %v2908_v21 }
 0x1cb   : > { %v1845_v14 = vpop.f32.mrb[15].mxu0  ;;  %859 = vmatprep.mubr.f32.mxu1 %v2537_v0  ;;  %v1869_v15 = vpop.f32.mrb[15].mxu1  ;;  %v2947_v5 = vshrl.u32 %v749_v4, 7 }
 0x1cc   : > { %v705_v16 = vmax.f32 %v651_v11, 0.0  ;;  %v1846_v17 = vadd.f32 %v1845_v14, %v1844_v12  ;;  %v1870_v18 = vadd.f32 %v1869_v15, %v1868_v13  ;;  %v713_v35 = vmax.f32 %v691_v34, 0.0 }
 0x1cd   : > { %v751_v6 = vsub.s32 0, %v2947_v5  ;;  %v755_v8 = vsub.s32 1, %v2947_v5 }
 0x1ce   : > { %v656_v19 = vadd.f32 %v1846_v17, %v2908_v21  ;;  %860 = vmatmul.mubr.f32.gmra.mrb[28].mxu1 %v705_v16  ;;  %v696_v36 = vadd.f32 %v1870_v18, %v2908_v21  ;;  %v1032_v21 = vld [vmem:[#allocation8 + $0x80] sm:$0xff] }
 0x1cf   : > { %865 = vmatprep.mubr.f32.mxu1 %v2537_v0  ;;  %v1953_v48 = vpack.c.bf16 %v1034_v47, %v1032_v21  ;;  %v2956_v9 = vrot.slane %v747_v7, %v751_v6  ;;  %v2960_v10 = vrot.slane %v747_v7, %v755_v8 }
 0x1d0   : > { %v706_v22 = vmax.f32 %v656_v19, 0.0  ;;  %v714_v37 = vmax.f32 %v696_v36, 0.0  ;;  %v968_v36 = vld [vmem:[%s2865_s29] sm:$0xff] }
 0x1d1   : > { %1954 = vmatpush1.bf16.msra.mxu0 %v1953_v48 }
 0x1d2   : > { %866 = vmatmul.mubr.f32.gmra.mrb[30].mxu1 %v706_v22  ;;  %1956 = vmatprep.subr.bf16.mxu0 %v1955_v51 }
 0x1d3   : > { %871 = vmatprep.mubr.f32.mxu1 %v2537_v0 }
 0x1d5   : > { %1958 = vmatpush1.bf16.msra.mxu0 %v1957_v54  ;;  %v970_v54 = vld [vmem:[%s2865_s29 + $0x10] sm:$0xff] }
 0x1d6   : > { %872 = vmatmul.mubr.f32.gmra.mrb[32].mxu1 %v707_v23  ;;  %1960 = vmatprep.subr.bf16.mxu0 %v1959_v57 }
 0x1d7   : > { %877 = vmatprep.mubr.f32.mxu1 %v2537_v0 }
 0x1d9   : > { %1962 = vmatpush1.bf16.msra.mxu0 %v1961_v60 }
 0x1da   : > { %878 = vmatmul.mubr.f32.gmra.mrb[34].mxu1 %v708_v26  ;;  %1964 = vmatprep.subr.bf16.mxu0 %v1963_v63 }
 0x1db   : > { %883 = vmatprep.mubr.f32.mxu1 %v2537_v0 }
 0x1dd   : > { %1966 = vmatpush1.bf16.msra.mxu0 %v1965_v3 }
 0x1de   : > { %884 = vmatmul.mubr.f32.gmra.mrb[36].mxu1 %v709_v28 }
 0x1df   : > { %889 = vmatprep.mubr.f32.mxu1 %v2537_v0 }
 0x1e2   : > { %890 = vmatmul.mubr.f32.gmra.mrb[38].mxu1 %v710_v29 }
 0x1e3   : > { %895 = vmatprep.mubr.f32.mxu1 %v2537_v0 }
 0x1e6   : > { %896 = vmatmul.mubr.f32.gmra.mrb[40].mxu1 %v711_v31 }
 0x1e7   : > { %901 = vmatprep.mubr.f32.mxu1 %v2537_v0 }
 0x1ea   : > { %902 = vmatmul.mubr.f32.gmra.mrb[42].mxu1 %v712_v33 }
 0x1eb   : > { %907 = vmatprep.mubr.f32.mxu1 %v2537_v0 }
 0x1ee   : > { %908 = vmatmul.mubr.f32.gmra.mrb[44].mxu1 %v713_v35 }
 0x1ef   : > { %913 = vmatprep.mubr.f32.mxu1 %v2537_v0 }
 0x1f2   : > { %914 = vmatmul.mubr.f32.gmra.mrb[46].mxu1 %v714_v37 }
 0x289   : > { %v825_v11 = vpop.f32.mrb[16].mxu1 }
 0x28a   : > { %v826_v12 = vadd.f32 %v825_v11, %v2956_v9  ;;  %v827_v13 = vpop.f32.mrb[17].mxu1 }
 0x28b   : > { %v828_v14 = vadd.f32 %v827_v13, %v2960_v10 }
 0x28c   : > { %1445 = vst [vmem:[%s2965_s22] sm:$0xff] %v826_v12 }
 0x28d   : > { %v920_v15 = vmul.f32 0.5, %v828_v14  ;;  %1461 = vst [vmem:[%s2969_s24] sm:$0xff] %v828_v14  ;;  %v831_v16 = vpop.f32.mrb[18].mxu1 }
 0x28e   : > { %v832_v17 = vadd.f32 %v831_v16, %v2956_v9  ;;  %v833_v18 = vpop.f32.mrb[19].mxu1  ;;  %v972_v16 = vld [vmem:[%s2865_s29 + $0x20] sm:$0xff] }
 0x28f   : > { %v936_v19 = vmul.f32 1.442695, %v920_v15  ;;  %v834_v20 = vadd.f32 %v833_v18, %v2960_v10 }
 0x290   : > { %1446 = vst [vmem:[%s2965_s22 + $0x8] sm:$0xff] %v832_v17 }
 0x291   : > { %2084 = vpow2.f32 %v936_v19  ;;  %v921_v22 = vmul.f32 0.5, %v834_v20  ;;  %1462 = vst [vmem:[%s2969_s24 + $0x8] sm:$0xff] %v834_v20  ;;  %v837_v23 = vpop.f32.mrb[20].mxu1 }
 0x292   : > { %v2977_v24 = vadd.f32 %v837_v23, %v2956_v9  ;;  %v839_v26 = vpop.f32.mrb[21].mxu1 }
 0x293   : > { %v938_v27 = vmul.f32 1.442695, %v921_v22  ;;  %v840_v28 = vadd.f32 %v839_v26, %v2960_v10 }
 0x294   : > { %1447 = vst [vmem:[%s2965_s22 + $0x10] sm:$0xff] %v2977_v24 }
 0x295   : > { %2086 = vpow2.f32 %v938_v27  ;;  %v922_v25 = vmul.f32 0.5, %v840_v28  ;;  %1463 = vst [vmem:[%s2969_s24 + $0x10] sm:$0xff] %v840_v28  ;;  %v843_v29 = vpop.f32.mrb[22].mxu1  ;;  %v973_v28 = vld [vmem:[%s2865_s29 + $0x28] sm:$0xff] }
 0x296   : > { %v2984_v30 = vadd.f32 %v843_v29, %v2956_v9  ;;  %v845_v31 = vpop.f32.mrb[23].mxu1 }
 0x297   : > { %v940_v32 = vmul.f32 1.442695, %v922_v25  ;;  %v846_v33 = vadd.f32 %v845_v31, %v2960_v10 }
 0x298   : > { %1448 = vst [vmem:[%s2965_s22 + $0x18] sm:$0xff] %v2984_v30 }
 0x299   : > { %2088 = vpow2.f32 %v940_v32  ;;  %v923_v34 = vmul.f32 0.5, %v846_v33  ;;  %1464 = vst [vmem:[%s2969_s24 + $0x18] sm:$0xff] %v846_v33  ;;  %v849_v35 = vpop.f32.mrb[24].mxu1 }
 0x29a   : > { %v2992_v37 = vadd.f32 %v849_v35, %v2956_v9  ;;  %v851_v38 = vpop.f32.mrb[25].mxu1 }
 0x29b   : > { %v2085_v39 = vpop.eup %2084  ;;  %v942_v40 = vmul.f32 1.442695, %v923_v34  ;;  %v852_v41 = vadd.f32 %v851_v38, %v2960_v10  ;;  %v974_v38 = vld [vmem:[%s2865_s29 + $0x30] sm:$0xff] }
 0x29c   : > { %1449 = vst [vmem:[%s2965_s22 + $0x20] sm:$0xff] %v2992_v37  ;;  %v984_v42 = vmul.f32 %v2085_v39, %v968_v36 }
 0x29d   : > { %2090 = vpow2.f32 %v942_v40  ;;  %v924_v43 = vmul.f32 0.5, %v852_v41  ;;  %1465 = vst [vmem:[%s2969_s24 + $0x20] sm:$0xff] %v852_v41  ;;  %v855_v44 = vpop.f32.mrb[26].mxu1 }
 0x29e   : > { %v3000_v46 = vadd.f32 %v855_v44, %v2956_v9  ;;  %v857_v21 = vpop.f32.mrb[27].mxu1  ;;  %v1000_v47 = vadd.f32 %v984_v42, %v826_v12 }
 0x29f   : > { %v2087_v48 = vpop.eup %2086  ;;  %v944_v49 = vmul.f32 1.442695, %v924_v43  ;;  %v858_v50 = vadd.f32 %v857_v21, %v2960_v10 }
 0x2a0   : > { %1450 = vst [vmem:[%s2965_s22 + $0x28] sm:$0xff] %v3000_v46  ;;  %1125 = vmatmul.mubr.f32.vlgmr.msra.gmra.mrb[16].mxu0 %v1000_v47  ;;  %v985_v51 = vmul.f32 %v2087_v48, %v969_v45  ;;  %v975_v47 = vld [vmem:[%s2865_s29 + $0x38] sm:$0xff] }
 0x2a1   : > { %2092 = vpow2.f32 %v944_v49  ;;  %v925_v52 = vmul.f32 0.5, %v858_v50  ;;  %1466 = vst [vmem:[%s2969_s24 + $0x28] sm:$0xff] %v858_v50  ;;  %v861_v53 = vpop.f32.mrb[28].mxu1  ;;  %1130 = vmatprep.mubr.f32.mxu0 %v2537_v0 }
 0x2a2   : > { %v3009_v55 = vadd.f32 %v861_v53, %v2956_v9  ;;  %v863_v56 = vpop.f32.mrb[29].mxu1  ;;  %v1001_v57 = vadd.f32 %v985_v51, %v832_v17 }
 0x2a3   : > { %v2089_v58 = vpop.eup %2088  ;;  %v946_v59 = vmul.f32 1.442695, %v925_v52  ;;  %v864_v60 = vadd.f32 %v863_v56, %v2960_v10 }
 0x2a4   : > { %1451 = vst [vmem:[%s2965_s22 + $0x30] sm:$0xff] %v3009_v55  ;;  %1131 = vmatmul.mubr.f32.gmra.mrb[18].mxu0 %v1001_v57  ;;  %v986_v61 = vmul.f32 %v2089_v58, %v970_v54  ;;  %v976_v57 = vld [vmem:[%s2865_s29 + $0x40] sm:$0xff] }
 0x2a5   : > { %2094 = vpow2.f32 %v946_v59  ;;  %v926_v62 = vmul.f32 0.5, %v864_v60  ;;  %1467 = vst [vmem:[%s2969_s24 + $0x30] sm:$0xff] %v864_v60  ;;  %v867_v63 = vpop.f32.mrb[30].mxu1  ;;  %1136 = vmatprep.mubr.f32.mxu0 %v2537_v0 }
 0x2a6   : > { %v3018_v2 = vadd.f32 %v867_v63, %v2956_v9  ;;  %v869_v3 = vpop.f32.mrb[31].mxu1  ;;  %v1002_v4 = vadd.f32 %v986_v61, %v2977_v24 }
 0x2a7   : > { %v2091_v7 = vpop.eup %2090  ;;  %v948_v11 = vmul.f32 1.442695, %v926_v62  ;;  %v870_v12 = vadd.f32 %v869_v3, %v2960_v10 }
 0x2a8   : > { %1452 = vst [vmem:[%s2965_s22 + $0x38] sm:$0xff] %v3018_v2  ;;  %1137 = vmatmul.mubr.f32.gmra.mrb[20].mxu0 %v1002_v4  ;;  %v987_v13 = vmul.f32 %v2091_v7, %v971_v1  ;;  %v977_v4 = vld [vmem:[%s2865_s29 + $0x48] sm:$0xff] }
 0x2a9   : > { %2096 = vpow2.f32 %v948_v11  ;;  %v927_v14 = vmul.f32 0.5, %v870_v12  ;;  %1468 = vst [vmem:[%s2969_s24 + $0x38] sm:$0xff] %v870_v12  ;;  %v873_v15 = vpop.f32.mrb[32].mxu1  ;;  %1142 = vmatprep.mubr.f32.mxu0 %v2537_v0 }
 0x2aa   : > { %v3028_v17 = vadd.f32 %v873_v15, %v2956_v9  ;;  %v875_v18 = vpop.f32.mrb[33].mxu1  ;;  %v1003_v19 = vadd.f32 %v987_v13, %v2984_v30 }
 0x2ab   : > { %v2093_v20 = vpop.eup %2092  ;;  %v950_v22 = vmul.f32 1.442695, %v927_v14  ;;  %v876_v23 = vadd.f32 %v875_v18, %v2960_v10 }
 0x2ac   : > { %1453 = vst [vmem:[%s2965_s22 + $0x40] sm:$0xff] %v3028_v17  ;;  %1143 = vmatmul.mubr.f32.gmra.mrb[22].mxu0 %v1003_v19  ;;  %v988_v24 = vmul.f32 %v2093_v20, %v972_v16  ;;  %v978_v19 = vld [vmem:[%s2865_s29 + $0x50] sm:$0xff] }
 0x2ad   : > { %2098 = vpow2.f32 %v950_v22  ;;  %v928_v26 = vmul.f32 0.5, %v876_v23  ;;  %1469 = vst [vmem:[%s2969_s24 + $0x40] sm:$0xff] %v876_v23  ;;  %v879_v27 = vpop.f32.mrb[34].mxu1  ;;  %1148 = vmatprep.mubr.f32.mxu0 %v2537_v0 }
 0x2ae   : > { %v3038_v25 = vadd.f32 %v879_v27, %v2956_v9  ;;  %v881_v29 = vpop.f32.mrb[35].mxu1  ;;  %v1004_v30 = vadd.f32 %v988_v24, %v2992_v37 }
 0x2af   : > { %v2095_v31 = vpop.eup %2094  ;;  %v952_v32 = vmul.f32 1.442695, %v928_v26  ;;  %v882_v33 = vadd.f32 %v881_v29, %v2960_v10 }
 0x2b0   : > { %1454 = vst [vmem:[%s2965_s22 + $0x48] sm:$0xff] %v3038_v25  ;;  %1149 = vmatmul.mubr.f32.gmra.mrb[24].mxu0 %v1004_v30  ;;  %v989_v34 = vmul.f32 %v2095_v31, %v973_v28  ;;  %v979_v30 = vld [vmem:[%s2865_s29 + $0x58] sm:$0xff] }
 0x2b1   : > { %2100 = vpow2.f32 %v952_v32  ;;  %v929_v35 = vmul.f32 0.5, %v882_v33  ;;  %1470 = vst [vmem:[%s2969_s24 + $0x48] sm:$0xff] %v882_v33  ;;  %v885_v36 = vpop.f32.mrb[36].mxu1  ;;  %1154 = vmatprep.mubr.f32.mxu0 %v2537_v0 }
 0x2b2   : > { %v3048_v37 = vadd.f32 %v885_v36, %v2956_v9  ;;  %v887_v39 = vpop.f32.mrb[37].mxu1  ;;  %v1005_v40 = vadd.f32 %v989_v34, %v3000_v46 }
 0x2b3   : > { %v2097_v41 = vpop.eup %2096  ;;  %v954_v42 = vmul.f32 1.442695, %v929_v35  ;;  %v888_v43 = vadd.f32 %v887_v39, %v2960_v10  ;;  %v980_v39 = vld [vmem:[%s2865_s29 + $0x60] sm:$0xff] }
 0x2b4   : > { %1455 = vst [vmem:[%s2965_s22 + $0x50] sm:$0xff] %v3048_v37  ;;  %1155 = vmatmul.mubr.f32.gmra.mrb[26].mxu0 %v1005_v40  ;;  %v990_v44 = vmul.f32 %v2097_v41, %v974_v38 }
 0x2b5   : > { %2102 = vpow2.f32 %v954_v42  ;;  %v930_v45 = vmul.f32 0.5, %v888_v43  ;;  %1471 = vst [vmem:[%s2969_s24 + $0x50] sm:$0xff] %v888_v43  ;;  %v891_v21 = vpop.f32.mrb[38].mxu1  ;;  %1160 = vmatprep.mubr.f32.mxu0 %v2537_v0 }
 0x2b6   : > { %v3058_v46 = vadd.f32 %v891_v21, %v2956_v9  ;;  %v893_v48 = vpop.f32.mrb[39].mxu1  ;;  %v1006_v49 = vadd.f32 %v990_v44, %v3009_v55 }
 0x2b7   : > { %v2099_v50 = vpop.eup %2098  ;;  %v956_v51 = vmul.f32 1.442695, %v930_v45  ;;  %v894_v52 = vadd.f32 %v893_v48, %v2960_v10  ;;  %v982_v45 = vld [vmem:[%s2865_s29 + $0x70] sm:$0xff]  ;;  %v983_v48 = vld [vmem:[%s2865_s29 + $0x78] sm:$0xff] }
 0x2b8   : > { %1456 = vst [vmem:[%s2965_s22 + $0x58] sm:$0xff] %v3058_v46  ;;  %1161 = vmatmul.mubr.f32.gmra.mrb[28].mxu0 %v1006_v49  ;;  %v991_v53 = vmul.f32 %v2099_v50, %v975_v47 }
 0x2b9   : > { %2104 = vpow2.f32 %v956_v51  ;;  %v931_v54 = vmul.f32 0.5, %v894_v52  ;;  %1472 = vst [vmem:[%s2969_s24 + $0x58] sm:$0xff] %v894_v52  ;;  %v897_v56 = vpop.f32.mrb[40].mxu1  ;;  %1166 = vmatprep.mubr.f32.mxu0 %v2537_v0 }
 0x2ba   : > { %v3068_v55 = vadd.f32 %v897_v56, %v2956_v9  ;;  %v899_v58 = vpop.f32.mrb[41].mxu1  ;;  %v1007_v59 = vadd.f32 %v991_v53, %v3018_v2 }
 0x2bb   : > { %v2101_v60 = vpop.eup %2100  ;;  %v958_v61 = vmul.f32 1.442695, %v931_v54  ;;  %v900_v62 = vadd.f32 %v899_v58, %v2960_v10 }
 0x2bc   : > { %1457 = vst [vmem:[%s2965_s22 + $0x60] sm:$0xff] %v3068_v55  ;;  %1167 = vmatmul.mubr.f32.gmra.mrb[30].mxu0 %v1007_v59  ;;  %v992_v63 = vmul.f32 %v2101_v60, %v976_v57 }
 0x2bd   : > { %2106 = vpow2.f32 %v958_v61  ;;  %v932_v1 = vmul.f32 0.5, %v900_v62  ;;  %1473 = vst [vmem:[%s2969_s24 + $0x60] sm:$0xff] %v900_v62  ;;  %v903_v3 = vpop.f32.mrb[42].mxu1  ;;  %1172 = vmatprep.mubr.f32.mxu0 %v2537_v0 }
 0x2be   : > { %v904_v2 = vadd.f32 %v903_v3, %v2956_v9  ;;  %v905_v7 = vpop.f32.mrb[43].mxu1  ;;  %v1008_v11 = vadd.f32 %v992_v63, %v3028_v17 }
 0x2bf   : > { %v2103_v12 = vpop.eup %2102  ;;  %v960_v13 = vmul.f32 1.442695, %v932_v1  ;;  %v906_v14 = vadd.f32 %v905_v7, %v2960_v10 }
 0x2c0   : > { %1458 = vst [vmem:[%s2965_s22 + $0x68] sm:$0xff] %v904_v2  ;;  %1173 = vmatmul.mubr.f32.gmra.mrb[32].mxu0 %v1008_v11  ;;  %v993_v15 = vmul.f32 %v2103_v12, %v977_v4 }
 0x2c1   : > { %2108 = vpow2.f32 %v960_v13  ;;  %v933_v16 = vmul.f32 0.5, %v906_v14  ;;  %1474 = vst [vmem:[%s2969_s24 + $0x68] sm:$0xff] %v906_v14  ;;  %v909_v18 = vpop.f32.mrb[44].mxu1  ;;  %1178 = vmatprep.mubr.f32.mxu0 %v2537_v0 }
 0x2c2   : > { %v910_v20 = vadd.f32 %v909_v18, %v2956_v9  ;;  %v911_v17 = vpop.f32.mrb[45].mxu1  ;;  %v1009_v22 = vadd.f32 %v993_v15, %v3038_v25 }
 0x2c3   : > { %v2105_v23 = vpop.eup %2104  ;;  %v962_v24 = vmul.f32 1.442695, %v933_v16  ;;  %v912_v26 = vadd.f32 %v911_v17, %v2960_v10 }
 0x2c4   : > { %1459 = vst [vmem:[%s2965_s22 + $0x70] sm:$0xff] %v910_v20  ;;  %1179 = vmatmul.mubr.f32.gmra.mrb[34].mxu0 %v1009_v22  ;;  %v994_v27 = vmul.f32 %v2105_v23, %v978_v19 }
 0x2c5   : > { %2110 = vpow2.f32 %v962_v24  ;;  %v934_v28 = vmul.f32 0.5, %v912_v26  ;;  %1475 = vst [vmem:[%s2969_s24 + $0x70] sm:$0xff] %v912_v26  ;;  %v915_v29 = vpop.f32.mrb[46].mxu1  ;;  %1184 = vmatprep.mubr.f32.mxu0 %v2537_v0 }
 0x2c6   : > { %v916_v31 = vadd.f32 %v915_v29, %v2956_v9  ;;  %v917_v25 = vpop.f32.mrb[47].mxu1  ;;  %v1010_v32 = vadd.f32 %v994_v27, %v3048_v37 }
 0x2c7   : > { %v2107_v33 = vpop.eup %2106  ;;  %v964_v34 = vmul.f32 1.442695, %v934_v28  ;;  %v918_v35 = vadd.f32 %v917_v25, %v2960_v10  ;;  %v981_v10 = vld [vmem:[%s2865_s29 + $0x68] sm:$0xff] }
 0x2c8   : > { %1460 = vst [vmem:[%s2965_s22 + $0x78] sm:$0xff] %v916_v31  ;;  %1185 = vmatmul.mubr.f32.gmra.mrb[36].mxu0 %v1010_v32  ;;  %v995_v36 = vmul.f32 %v2107_v33, %v979_v30 }
 0x2c9   : > { %2112 = vpow2.f32 %v964_v34  ;;  %v935_v38 = vmul.f32 0.5, %v918_v35  ;;  %1476 = vst [vmem:[%s2969_s24 + $0x78] sm:$0xff] %v918_v35  ;;  %1190 = vmatprep.mubr.f32.mxu0 %v2537_v0 }
 0x2ca   : > { %v1011_v9 = vadd.f32 %v995_v36, %v3058_v46 }
 0x2cb   : > { %v2109_v40 = vpop.eup %2108  ;;  %v966_v41 = vmul.f32 1.442695, %v935_v38 }
 0x2cc   : > { %1191 = vmatmul.mubr.f32.gmra.mrb[38].mxu0 %v1011_v9  ;;  %v996_v37 = vmul.f32 %v2109_v40, %v980_v39 }
 0x2cd   : > { %2114 = vpow2.f32 %v966_v41  ;;  %1196 = vmatprep.mubr.f32.mxu0 %v2537_v0 }
 0x2ce   : > { %v1012_v42 = vadd.f32 %v996_v37, %v3068_v55 }
 0x2cf   : > { %v2111_v43 = vpop.eup %2110 }
 0x2d0   : > { %1197 = vmatmul.mubr.f32.gmra.mrb[40].mxu0 %v1012_v42  ;;  %v997_v44 = vmul.f32 %v2111_v43, %v981_v10 }
 0x2d1   : > { %1202 = vmatprep.mubr.f32.mxu0 %v2537_v0 }
 0x2d2   : > { %v1013_v21 = vadd.f32 %v997_v44, %v904_v2 }
 0x2d3   : > { %v2113_v47 = vpop.eup %2112 }
 0x2d4   : > { %1203 = vmatmul.mubr.f32.gmra.mrb[42].mxu0 %v1013_v21  ;;  %v998_v46 = vmul.f32 %v2113_v47, %v982_v45 }
 0x2d5   : > { %1208 = vmatprep.mubr.f32.mxu0 %v2537_v0 }
 0x2d6   : > { %v1014_v49 = vadd.f32 %v998_v46, %v910_v20 }
 0x2d7   : > { %v2115_v50 = vpop.eup %2114 }
 0x2d8   : > { %1209 = vmatmul.mubr.f32.gmra.mrb[44].mxu0 %v1014_v49  ;;  %v999_v51 = vmul.f32 %v2115_v50, %v983_v48 }
 0x2d9   : > { %1214 = vmatprep.mubr.f32.mxu0 %v2537_v0 }
 0x2da   : > { %v1015_v52 = vadd.f32 %v999_v51, %v916_v31 }
 0x2dc   : > { %1215 = vmatmul.mubr.f32.gmra.mrb[46].mxu0 %v1015_v52 }
 0x2dd   : > { %2401 = shalt.err (!%p2398_p2)
}
 0x2de   : > { %s2402_s28 = scalar_lea.hbm %s3114_s15, 2048  ;;  %s2406_s19 = scalar_lea.hbm %s3382_s10, 4096 }
 0x2df   : > { %p2403_p11 = scmp.ne.s32.totalorder %s3114_s15, %s2402_s28  ;;  %p2407_p12 = scmp.lt.u32.totalorder %s3114_s15, %s3382_s10 }
 0x2e0   : > { %p2408_p4 = scmp.lt.u32.totalorder %s2406_s19, %s2402_s28  ;;  %p2410_p6 = scmp.lt.u32.totalorder %s2402_s28, %s3114_s15 }
 0x2e1   : > { %p2404_p7 = pnand %p2403_p11, %p3383_p10 }
 0x2e2   : > { %p2409_p1 = por %p2408_p4, %p2407_p12 }
 0x2e3   : > { %p2405_p9 = pneg %p2404_p7 }
 0x2e4   : > { %p2411_p3 = por %p2410_p6, %p2409_p1 }
 0x2e6   : > { %p2412_p13 = pnand %p2411_p3, %p2405_p9 }
 0x2e8   : > { %2415 = shalt.err (!%p2412_p13)
}
 0x2e9   : > { %s2539_s9 = smov 128   ;;  %s2540_s22 = smov 8  }
 0x2ea   : > { %2000 = dma.vmem_to_hbm [thread:$0]  (%p3383_p10), %s3116_s30, 2048, %s3114_s15, %s3120_s8, %s2539_s9, %s2539_s9, %s2540_s22  }
 0x2eb   : > { %s3384_s18 = sld [smem:[#allocation32_spill]]  ;;  %s1534_s0 = sshll.u32 %s2969_s24, 4  ;;  %s3155_s0 = int_to_ptr.vmem [resolvable:$true] %s1534_s0 }
 0x2ec   : > { %s2416_s12 = scalar_lea.vmem %s3155_s0, 2048  ;;  %s2541_s28 = smov [#allocation14]  }
 0x2ed   : > { %p2417_p0 = scmp.ne.s32.totalorder %s3155_s0, %s2416_s12  ;;  %s2420_s21 = sshll.u32 %s2541_s28, 4  ;;  %s2421_s21 = int_to_ptr.vmem [resolvable:$false] %s2420_s21 }
 0x2ee   : > { %s2422_s30 = scalar_lea.vmem %s2421_s21, 4096  ;;  %p2423_p2 = scmp.lt.s32.totalorder %s3155_s0, %s2421_s21 }
 0x2ef   : > { %p2418_p8 = pnand %p2417_p0, %p3383_p10  ;;  %p2424_p11 = scmp.lt.s32.totalorder %s2422_s30, %s2416_s12 }
 0x2f1   : > { %s3152_s23 = scalar_lea.hbm %s3384_s18, %s1789_s27  ;;  %p2419_p5 = pneg %p2418_p8 }
 0x2f2   : > { %p2425_p7 = por %p2424_p11, %p2423_p2 }
 0x2f4   : > { %p2426_p9 = pnand %p2425_p7, %p2419_p5 }
 0x2f6   : > { %2429 = shalt.err (!%p2426_p9)
}
 0x2f7   : > { %s2430_s24 = scalar_lea.hbm %s3152_s23, 2048  ;;  %s2434_s29 = scalar_lea.hbm %s3384_s18, 4096 }
 0x2f8   : > { %p2431_p12 = scmp.ne.s32.totalorder %s3152_s23, %s2430_s24  ;;  %p2435_p6 = scmp.lt.u32.totalorder %s3152_s23, %s3384_s18 }
 0x2f9   : > { %p2436_p3 = scmp.lt.u32.totalorder %s2434_s29, %s2430_s24  ;;  %p2438_p0 = scmp.lt.u32.totalorder %s2430_s24, %s3152_s23 }
 0x2fa   : > { %p2432_p4 = pnand %p2431_p12, %p3383_p10 }
 0x2fb   : > { %p2437_p13 = por %p2436_p3, %p2435_p6 }
 0x2fc   : > { %p2433_p1 = pneg %p2432_p4 }
 0x2fd   : > { %p2439_p8 = por %p2438_p0, %p2437_p13 }
 0x2ff   : > { %p2440_p5 = pnand %p2439_p8, %p2433_p1 }
 0x301   : > { %2443 = shalt.err (!%p2440_p5)
}
 0x302   : > { %2001 = dma.vmem_to_hbm [thread:$0]  (%p3383_p10), %s3155_s0, 2048, %s3152_s23, %s3120_s8, %s2539_s9, %s2539_s9, %s2540_s22  }
 0x303   : > { %s3385_s6 = sld [smem:[#allocation29_spill]]  ;;  %s3209_s8 = scalar_lea.vmem [#allocation11], %s1731_s20 }
 0x304   : > { %s1788_s20 = sshll.u32 %s2621_s17, 12  ;;  %s1502_s9 = sshll.u32 %s3209_s8, 4  ;;  %s3267_s9 = int_to_ptr.vmem [resolvable:$true] %s1502_s9 }
 0x305   : > { %s3386_s0 = sld [smem:[#allocation30_spill]]  ;;  %s1478_s28 = scalar_lea.sflag [#allocation4], %s2840_s1 }
 0x306   : > { %s2444_s21 = scalar_lea.vmem %s3267_s9, 4096  ;;  %s2542_s17 = smov [#allocation11]  }
 0x307   : > { %p2445_p2 = scmp.ne.s32.totalorder %s3267_s9, %s2444_s21  ;;  %s2448_s30 = sshll.u32 %s2542_s17, 4  ;;  %s2449_s30 = int_to_ptr.vmem [resolvable:$false] %s2448_s30 }
 0x308   : > { %s2450_s24 = scalar_lea.vmem %s2449_s30, 8192  ;;  %p2451_p9 = scmp.lt.s32.totalorder %s3267_s9, %s2449_s30 }
 0x309   : > { %v1048_v0 = vld [vmem:[%s3385_s6] sm:$0x3]  ;;  %p2446_p11 = pnand %p2445_p2, %p3383_p10  ;;  %p2452_p12 = scmp.lt.s32.totalorder %s2450_s24, %s2444_s21 }
 0x30a   : > { %v3187_v53 = vrot.slane %v1048_v0, %v751_v6  ;;  %v3191_v54 = vrot.slane %v1048_v0, %v755_v8 }
 0x30b   : > { %s3265_s12 = scalar_lea.hbm %s3386_s0, %s1788_s20  ;;  %p2447_p7 = pneg %p2446_p11 }
 0x30c   : > { %p2453_p4 = por %p2452_p12, %p2451_p9 }
 0x30e   : > { %p2454_p1 = pnand %p2453_p4, %p2447_p7 }
 0x373   : > { %v1126_v56 = vpop.f32.mrb[16].mxu0 }
 0x374   : > { %v1127_v57 = vadd.f32 %v1126_v56, %v3187_v53  ;;  %v1128_v55 = vpop.f32.mrb[17].mxu0 }
 0x375   : > { %v1129_v58 = vadd.f32 %v1128_v55, %v3191_v54 }
 0x376   : > { %v1740_v59 = vmul.f32 -1.442695, %v1127_v57 }
 0x377   : > { %v1741_v60 = vmul.f32 -1.442695, %v1129_v58  ;;  %v1132_v61 = vpop.f32.mrb[18].mxu0 }
 0x378   : > { %2116 = vpow2.f32 %v1740_v59  ;;  %v1133_v62 = vadd.f32 %v1132_v61, %v3187_v53  ;;  %v1134_v63 = vpop.f32.mrb[19].mxu0 }
 0x379   : > { %2118 = vpow2.f32 %v1741_v60  ;;  %v1135_v6 = vadd.f32 %v1134_v63, %v3191_v54 }
 0x37a   : > { %v1742_v1 = vmul.f32 -1.442695, %v1133_v62 }
 0x37b   : > { %v1743_v5 = vmul.f32 -1.442695, %v1135_v6  ;;  %v1138_v8 = vpop.f32.mrb[20].mxu0 }
 0x37c   : > { %2120 = vpow2.f32 %v1742_v1  ;;  %v1139_v3 = vadd.f32 %v1138_v8, %v3187_v53  ;;  %v1140_v4 = vpop.f32.mrb[21].mxu0 }
 0x37d   : > { %2122 = vpow2.f32 %v1743_v5  ;;  %v1141_v2 = vadd.f32 %v1140_v4, %v3191_v54 }
 0x37e   : > { %v1744_v7 = vmul.f32 -1.442695, %v1139_v3 }
 0x37f   : > { %v1745_v11 = vmul.f32 -1.442695, %v1141_v2  ;;  %v1144_v12 = vpop.f32.mrb[22].mxu0 }
 0x380   : > { %2124 = vpow2.f32 %v1744_v7  ;;  %v1145_v13 = vadd.f32 %v1144_v12, %v3187_v53  ;;  %v1146_v14 = vpop.f32.mrb[23].mxu0 }
 0x381   : > { %2126 = vpow2.f32 %v1745_v11  ;;  %v1147_v15 = vadd.f32 %v1146_v14, %v3191_v54 }
 0x382   : > { %v2117_v16 = vpop.eup %2116  ;;  %v1746_v18 = vmul.f32 -1.442695, %v1145_v13 }
 0x383   : > { %v2119_v19 = vpop.eup %2118  ;;  %v1317_v20 = vadd.f32 1.0, %v2117_v16  ;;  %v1747_v17 = vmul.f32 -1.442695, %v1147_v15  ;;  %v1150_v22 = vpop.f32.mrb[24].mxu0 }
 0x384   : > { %v1318_v23 = vadd.f32 1.0, %v2119_v19  ;;  %2128 = vpow2.f32 %v1746_v18  ;;  %v1151_v24 = vadd.f32 %v1150_v22, %v3187_v53  ;;  %v1152_v26 = vpop.f32.mrb[25].mxu0 }
 0x385   : > { %2130 = vrcp.f32 %v1317_v20  ;;  %v1153_v27 = vadd.f32 %v1152_v26, %v3191_v54 }
 0x386   : > { %v2121_v28 = vpop.eup %2120  ;;  %2132 = vrcp.f32 %v1318_v23  ;;  %v1748_v29 = vmul.f32 -1.442695, %v1151_v24 }
 0x387   : > { %v2123_v30 = vpop.eup %2122  ;;  %v1319_v31 = vadd.f32 1.0, %v2121_v28  ;;  %2134 = vpow2.f32 %v1747_v17  ;;  %v1749_v25 = vmul.f32 -1.442695, %v1153_v27  ;;  %v1156_v32 = vpop.f32.mrb[26].mxu0 }
 0x388   : > { %v1320_v33 = vadd.f32 1.0, %v2123_v30  ;;  %2136 = vpow2.f32 %v1748_v29  ;;  %v1157_v34 = vadd.f32 %v1156_v32, %v3187_v53  ;;  %v1158_v35 = vpop.f32.mrb[27].mxu0 }
 0x389   : > { %2138 = vrcp.f32 %v1319_v31  ;;  %v1159_v36 = vadd.f32 %v1158_v35, %v3191_v54 }
 0x38a   : > { %v2125_v38 = vpop.eup %2124  ;;  %2140 = vrcp.f32 %v1320_v33  ;;  %v1750_v39 = vmul.f32 -1.442695, %v1157_v34 }
 0x38b   : > { %v2127_v9 = vpop.eup %2126  ;;  %v1321_v40 = vadd.f32 1.0, %v2125_v38  ;;  %2142 = vpow2.f32 %v1749_v25  ;;  %v1751_v41 = vmul.f32 -1.442695, %v1159_v36  ;;  %v1162_v37 = vpop.f32.mrb[28].mxu0 }
 0x38c   : > { %v1322_v10 = vadd.f32 1.0, %v2127_v9  ;;  %2144 = vpow2.f32 %v1750_v39  ;;  %v1163_v42 = vadd.f32 %v1162_v37, %v3187_v53  ;;  %v1164_v43 = vpop.f32.mrb[29].mxu0 }
 0x38d   : > { %2146 = vrcp.f32 %v1321_v40  ;;  %v1165_v44 = vadd.f32 %v1164_v43, %v3191_v54 }
 0x38e   : > { %v2129_v45 = vpop.eup %2128  ;;  %2148 = vrcp.f32 %v1322_v10  ;;  %v1752_v21 = vmul.f32 -1.442695, %v1163_v42 }
 0x38f   : > { %v2131_v47 = vpop.eup %2130  ;;  %v1323_v46 = vadd.f32 1.0, %v2129_v45  ;;  %2150 = vpow2.f32 %v1751_v41  ;;  %v1753_v48 = vmul.f32 -1.442695, %v1165_v44  ;;  %v1168_v49 = vpop.f32.mrb[30].mxu0 }
 0x390   : > { %v2133_v50 = vpop.eup %2132  ;;  %1413 = vst [vmem:[%s3209_s8] sm:$0xff] %v2131_v47  ;;  %2152 = vpow2.f32 %v1752_v21  ;;  %v1169_v51 = vadd.f32 %v1168_v49, %v3187_v53  ;;  %v1170_v52 = vpop.f32.mrb[31].mxu0 }
 0x391   : > { %v2135_v0 = vpop.eup %2134  ;;  %1414 = vst [vmem:[%s3209_s8 + $0x8] sm:$0xff] %v2133_v50  ;;  %2154 = vrcp.f32 %v1323_v46  ;;  %v1171_v56 = vadd.f32 %v1170_v52, %v3191_v54 }
 0x392   : > { %v2137_v57 = vpop.eup %2136  ;;  %v1324_v55 = vadd.f32 1.0, %v2135_v0  ;;  %2156 = vpow2.f32 %v1753_v48  ;;  %v1754_v58 = vmul.f32 -1.442695, %v1169_v51 }
 0x393   : > { %v2139_v59 = vpop.eup %2138  ;;  %v1325_v60 = vadd.f32 1.0, %v2137_v57  ;;  %v1755_v61 = vmul.f32 -1.442695, %v1171_v56  ;;  %v1174_v62 = vpop.f32.mrb[32].mxu0 }
 0x394   : > { %v2141_v63 = vpop.eup %2140  ;;  %1415 = vst [vmem:[%s3209_s8 + $0x10] sm:$0xff] %v2139_v59  ;;  %2158 = vrcp.f32 %v1324_v55  ;;  %v1175_v6 = vadd.f32 %v1174_v62, %v3187_v53  ;;  %v1176_v1 = vpop.f32.mrb[33].mxu0 }
 0x395   : > { %v2143_v5 = vpop.eup %2142  ;;  %1416 = vst [vmem:[%s3209_s8 + $0x18] sm:$0xff] %v2141_v63  ;;  %2160 = vrcp.f32 %v1325_v60  ;;  %v1177_v8 = vadd.f32 %v1176_v1, %v3191_v54 }
 0x396   : > { %v2145_v3 = vpop.eup %2144  ;;  %v1326_v4 = vadd.f32 1.0, %v2143_v5  ;;  %2162 = vpow2.f32 %v1754_v58  ;;  %v1756_v2 = vmul.f32 -1.442695, %v1175_v6 }
 0x397   : > { %v2147_v7 = vpop.eup %2146  ;;  %v1327_v11 = vadd.f32 1.0, %v2145_v3  ;;  %2164 = vpow2.f32 %v1755_v61  ;;  %v1757_v12 = vmul.f32 -1.442695, %v1177_v8  ;;  %v1180_v13 = vpop.f32.mrb[34].mxu0 }
 0x398   : > { %v2149_v14 = vpop.eup %2148  ;;  %1417 = vst [vmem:[%s3209_s8 + $0x20] sm:$0xff] %v2147_v7  ;;  %2166 = vrcp.f32 %v1326_v4  ;;  %v1181_v15 = vadd.f32 %v1180_v13, %v3187_v53  ;;  %v1182_v16 = vpop.f32.mrb[35].mxu0 }
 0x399   : > { %v2151_v18 = vpop.eup %2150  ;;  %1418 = vst [vmem:[%s3209_s8 + $0x28] sm:$0xff] %v2149_v14  ;;  %2168 = vrcp.f32 %v1327_v11  ;;  %v1183_v19 = vadd.f32 %v1182_v16, %v3191_v54 }
 0x39a   : > { %v2153_v20 = vpop.eup %2152  ;;  %v1328_v17 = vadd.f32 1.0, %v2151_v18  ;;  %2170 = vpow2.f32 %v1756_v2  ;;  %v1758_v22 = vmul.f32 -1.442695, %v1181_v15 }
 0x39b   : > { %v2155_v23 = vpop.eup %2154  ;;  %v1329_v24 = vadd.f32 1.0, %v2153_v20  ;;  %2172 = vpow2.f32 %v1757_v12  ;;  %v1186_v26 = vpop.f32.mrb[36].mxu0  ;;  %v1759_v28 = vmul.f32 -1.442695, %v1183_v19 }
 0x39c   : > { %v2157_v27 = vpop.eup %2156  ;;  %1419 = vst [vmem:[%s3209_s8 + $0x30] sm:$0xff] %v2155_v23  ;;  %2174 = vrcp.f32 %v1328_v17  ;;  %v1187_v29 = vadd.f32 %v1186_v26, %v3187_v53  ;;  %v1188_v30 = vpop.f32.mrb[37].mxu0 }
 0x39d   : > { %2176 = vrcp.f32 %v1329_v24  ;;  %v1330_v31 = vadd.f32 1.0, %v2157_v27  ;;  %v1189_v25 = vadd.f32 %v1188_v30, %v3191_v54 }
 0x39e   : > { %v2159_v32 = vpop.eup %2158  ;;  %2178 = vpow2.f32 %v1758_v22  ;;  %v1760_v33 = vmul.f32 -1.442695, %v1187_v29 }
 0x39f   : > { %v2161_v34 = vpop.eup %2160  ;;  %1420 = vst [vmem:[%s3209_s8 + $0x38] sm:$0xff] %v2159_v32  ;;  %2180 = vrcp.f32 %v1330_v31  ;;  %v1761_v35 = vmul.f32 -1.442695, %v1189_v25  ;;  %v1192_v36 = vpop.f32.mrb[38].mxu0 }
 0x3a0   : > { %v2163_v38 = vpop.eup %2162  ;;  %1421 = vst [vmem:[%s3209_s8 + $0x40] sm:$0xff] %v2161_v34  ;;  %2182 = vpow2.f32 %v1759_v28  ;;  %v1193_v39 = vadd.f32 %v1192_v36, %v3187_v53  ;;  %v1194_v9 = vpop.f32.mrb[39].mxu0 }
 0x3a1   : > { %v2165_v40 = vpop.eup %2164  ;;  %v1331_v41 = vadd.f32 1.0, %v2163_v38  ;;  %2184 = vpow2.f32 %v1760_v33  ;;  %v1195_v37 = vadd.f32 %v1194_v9, %v3191_v54 }
 0x3a2   : > { %v2167_v10 = vpop.eup %2166  ;;  %v1332_v42 = vadd.f32 1.0, %v2165_v40  ;;  %2186 = vpow2.f32 %v1761_v35  ;;  %v1762_v43 = vmul.f32 -1.442695, %v1193_v39 }
 0x3a3   : > { %v2169_v44 = vpop.eup %2168  ;;  %1422 = vst [vmem:[%s3209_s8 + $0x48] sm:$0xff] %v2167_v10  ;;  %2188 = vrcp.f32 %v1331_v41  ;;  %v1763_v45 = vmul.f32 -1.442695, %v1195_v37  ;;  %v1198_v21 = vpop.f32.mrb[40].mxu0 }
 0x3a4   : > { %v2171_v47 = vpop.eup %2170  ;;  %1423 = vst [vmem:[%s3209_s8 + $0x50] sm:$0xff] %v2169_v44  ;;  %2190 = vrcp.f32 %v1332_v42  ;;  %v1199_v46 = vadd.f32 %v1198_v21, %v3187_v53  ;;  %v1200_v48 = vpop.f32.mrb[41].mxu0 }
 0x3a5   : > { %v2173_v49 = vpop.eup %2172  ;;  %v1333_v50 = vadd.f32 1.0, %v2171_v47  ;;  %2192 = vpow2.f32 %v1762_v43  ;;  %v1201_v51 = vadd.f32 %v1200_v48, %v3191_v54 }
 0x3a6   : > { %v2175_v52 = vpop.eup %2174  ;;  %v1334_v0 = vadd.f32 1.0, %v2173_v49  ;;  %2194 = vpow2.f32 %v1763_v45  ;;  %v1764_v56 = vmul.f32 -1.442695, %v1199_v46 }
 0x3a7   : > { %v2177_v57 = vpop.eup %2176  ;;  %1424 = vst [vmem:[%s3209_s8 + $0x58] sm:$0xff] %v2175_v52  ;;  %2196 = vrcp.f32 %v1333_v50  ;;  %v1765_v55 = vmul.f32 -1.442695, %v1201_v51  ;;  %v1204_v58 = vpop.f32.mrb[42].mxu0 }
 0x3a8   : > { %v2179_v59 = vpop.eup %2178  ;;  %1425 = vst [vmem:[%s3209_s8 + $0x60] sm:$0xff] %v2177_v57  ;;  %2198 = vrcp.f32 %v1334_v0  ;;  %v1205_v60 = vadd.f32 %v1204_v58, %v3187_v53  ;;  %v1206_v61 = vpop.f32.mrb[43].mxu0 }
 0x3a9   : > { %v2181_v62 = vpop.eup %2180  ;;  %v1335_v63 = vadd.f32 1.0, %v2179_v59  ;;  %2200 = vpow2.f32 %v1764_v56  ;;  %v1207_v6 = vadd.f32 %v1206_v61, %v3191_v54 }
 0x3aa   : > { %v2183_v1 = vpop.eup %2182  ;;  %1426 = vst [vmem:[%s3209_s8 + $0x68] sm:$0xff] %v2181_v62  ;;  %2202 = vpow2.f32 %v1765_v55  ;;  %v1766_v5 = vmul.f32 -1.442695, %v1205_v60 }
 0x3ab   : > { %v2185_v8 = vpop.eup %2184  ;;  %2204 = vrcp.f32 %v1335_v63  ;;  %v1336_v3 = vadd.f32 1.0, %v2183_v1  ;;  %v1210_v4 = vpop.f32.mrb[44].mxu0  ;;  %v1767_v11 = vmul.f32 -1.442695, %v1207_v6 }
 0x3ac   : > { %v2187_v2 = vpop.eup %2186  ;;  %v1337_v7 = vadd.f32 1.0, %v2185_v8  ;;  %2206 = vpow2.f32 %v1766_v5  ;;  %v1211_v12 = vadd.f32 %v1210_v4, %v3187_v53  ;;  %v1212_v13 = vpop.f32.mrb[45].mxu0 }
 0x3ad   : > { %v2189_v14 = vpop.eup %2188  ;;  %2208 = vrcp.f32 %v1336_v3  ;;  %v1338_v15 = vadd.f32 1.0, %v2187_v2  ;;  %v1213_v16 = vadd.f32 %v1212_v13, %v3191_v54 }
 0x3ae   : > { %v2191_v18 = vpop.eup %2190  ;;  %1427 = vst [vmem:[%s3209_s8 + $0x70] sm:$0xff] %v2189_v14  ;;  %2210 = vrcp.f32 %v1337_v7  ;;  %v1768_v19 = vmul.f32 -1.442695, %v1211_v12 }
 0x3af   : > { %v2193_v20 = vpop.eup %2192  ;;  %1428 = vst [vmem:[%s3209_s8 + $0x78] sm:$0xff] %v2191_v18  ;;  %2212 = vrcp.f32 %v1338_v15  ;;  %v1216_v17 = vpop.f32.mrb[46].mxu0  ;;  %v1769_v24 = vmul.f32 -1.442695, %v1213_v16 }
 0x3b0   : > { %v2195_v22 = vpop.eup %2194  ;;  %v1339_v23 = vadd.f32 1.0, %v2193_v20  ;;  %2214 = vpow2.f32 %v1767_v11  ;;  %v1217_v26 = vadd.f32 %v1216_v17, %v3187_v53  ;;  %v1218_v27 = vpop.f32.mrb[47].mxu0 }
 0x3b1   : > { %v2197_v28 = vpop.eup %2196  ;;  %v1340_v29 = vadd.f32 1.0, %v2195_v22  ;;  %2216 = vpow2.f32 %v1768_v19  ;;  %v1219_v30 = vadd.f32 %v1218_v27, %v3191_v54 }
 0x3b2   : > { %v2199_v31 = vpop.eup %2198  ;;  %1429 = vst [vmem:[%s3209_s8 + $0x80] sm:$0xff] %v2197_v28  ;;  %2218 = vrcp.f32 %v1339_v23  ;;  %v1770_v25 = vmul.f32 -1.442695, %v1217_v26 }
 0x3b3   : > { %v2201_v32 = vpop.eup %2200  ;;  %1430 = vst [vmem:[%s3209_s8 + $0x88] sm:$0xff] %v2199_v31  ;;  %2220 = vrcp.f32 %v1340_v29  ;;  %v1771_v53 = vmul.f32 -1.442695, %v1219_v30 }
 0x3b4   : > { %v2203_v33 = vpop.eup %2202  ;;  %v1341_v34 = vadd.f32 1.0, %v2201_v32  ;;  %2222 = vpow2.f32 %v1769_v24 }
 0x3b5   : > { %v2205_v35 = vpop.eup %2204  ;;  %v1342_v36 = vadd.f32 1.0, %v2203_v33  ;;  %2224 = vpow2.f32 %v1770_v25 }
 0x3b6   : > { %v2207_v38 = vpop.eup %2206  ;;  %1431 = vst [vmem:[%s3209_s8 + $0x90] sm:$0xff] %v2205_v35  ;;  %2226 = vrcp.f32 %v1341_v34 }
 0x3b7   : > { %v2209_v54 = vpop.eup %2208  ;;  %2228 = vrcp.f32 %v1342_v36  ;;  %v1343_v39 = vadd.f32 1.0, %v2207_v38 }
 0x3b8   : > { %v2211_v9 = vpop.eup %2210  ;;  %1432 = vst [vmem:[%s3209_s8 + $0x98] sm:$0xff] %v2209_v54  ;;  %2230 = vpow2.f32 %v1771_v53 }
 0x3b9   : > { %v2213_v40 = vpop.eup %2212  ;;  %1433 = vst [vmem:[%s3209_s8 + $0xa0] sm:$0xff] %v2211_v9  ;;  %2232 = vrcp.f32 %v1343_v39 }
 0x3ba   : > { %v2215_v41 = vpop.eup %2214  ;;  %1434 = vst [vmem:[%s3209_s8 + $0xa8] sm:$0xff] %v2213_v40 }
 0x3bb   : > { %v2217_v37 = vpop.eup %2216  ;;  %v1344_v10 = vadd.f32 1.0, %v2215_v41 }
 0x3bc   : > { %v2219_v42 = vpop.eup %2218  ;;  %v1345_v43 = vadd.f32 1.0, %v2217_v37 }
 0x3bd   : > { %v2221_v44 = vpop.eup %2220  ;;  %1435 = vst [vmem:[%s3209_s8 + $0xb0] sm:$0xff] %v2219_v42  ;;  %2234 = vrcp.f32 %v1344_v10 }
 0x3be   : > { %v2223_v45 = vpop.eup %2222  ;;  %1436 = vst [vmem:[%s3209_s8 + $0xb8] sm:$0xff] %v2221_v44  ;;  %2236 = vrcp.f32 %v1345_v43 }
 0x3bf   : > { %v2225_v21 = vpop.eup %2224  ;;  %v1346_v47 = vadd.f32 1.0, %v2223_v45 }
 0x3c0   : > { %v2227_v46 = vpop.eup %2226  ;;  %v1347_v48 = vadd.f32 1.0, %v2225_v21 }
 0x3c1   : > { %v2229_v49 = vpop.eup %2228  ;;  %1437 = vst [vmem:[%s3209_s8 + $0xc0] sm:$0xff] %v2227_v46  ;;  %2238 = vrcp.f32 %v1346_v47 }
 0x3c2   : > { %v2231_v50 = vpop.eup %2230  ;;  %1438 = vst [vmem:[%s3209_s8 + $0xc8] sm:$0xff] %v2229_v49  ;;  %2240 = vrcp.f32 %v1347_v48 }
 0x3c3   : > { %v2233_v51 = vpop.eup %2232  ;;  %v1348_v52 = vadd.f32 1.0, %v2231_v50 }
 0x3c4   : > { %1439 = vst [vmem:[%s3209_s8 + $0xd0] sm:$0xff] %v2233_v51 }
 0x3c5   : > { %2242 = vrcp.f32 %v1348_v52 }
 0x3c7   : > { %v2235_v0 = vpop.eup %2234 }
 0x3c8   : > { %v2237_v56 = vpop.eup %2236  ;;  %1440 = vst [vmem:[%s3209_s8 + $0xd8] sm:$0xff] %v2235_v0 }
 0x3c9   : > { %1441 = vst [vmem:[%s3209_s8 + $0xe0] sm:$0xff] %v2237_v56 }
 0x3cb   : > { %v2239_v57 = vpop.eup %2238 }
 0x3cc   : > { %v2241_v55 = vpop.eup %2240  ;;  %1442 = vst [vmem:[%s3209_s8 + $0xe8] sm:$0xff] %v2239_v57 }
 0x3cd   : > { %1443 = vst [vmem:[%s3209_s8 + $0xf0] sm:$0xff] %v2241_v55 }
 0x3cf   : > { %v2243_v58 = vpop.eup %2242 }
 0x3d0   : > { %1444 = vst [vmem:[%s3209_s8 + $0xf8] sm:$0xff] %v2243_v58 }
 0x3d1   : > { %2457 = shalt.err (!%p2454_p1)
}
 0x3d2   : > { %s2458_s27 = scalar_lea.hbm %s3265_s12, 4096  ;;  %s2462_s19 = scalar_lea.hbm %s3386_s0, 8192 }
 0x3d3   : > { %p2459_p6 = scmp.ne.s32.totalorder %s3265_s12, %s2458_s27  ;;  %p2463_p0 = scmp.lt.u32.totalorder %s3265_s12, %s3386_s0 }
 0x3d4   : > { %p2464_p8 = scmp.lt.u32.totalorder %s2462_s19, %s2458_s27  ;;  %p2466_p2 = scmp.lt.u32.totalorder %s2458_s27, %s3265_s12 }
 0x3d5   : > { %p2460_p3 = pnand %p2459_p6, %p3383_p10 }
 0x3d6   : > { %p2465_p5 = por %p2464_p8, %p2463_p0 }
 0x3d7   : > { %p2461_p13 = pneg %p2460_p3 }
 0x3d8   : > { %p2467_p11 = por %p2466_p2, %p2465_p5 }
 0x3da   : > { %p2468_p7 = pnand %p2467_p11, %p2461_p13 }
 0x3dc   : > { %2471 = shalt.err (!%p2468_p7)
}
 0x3dd   : > { %s2543_s25 = smov 256   ;;  %s2544_s6 = smov 16  }
 0x3de   : > { %1999 = dma.vmem_to_hbm [thread:$0]  (%p3383_p10), %s3267_s9, 4096, %s3265_s12, %s1478_s28, %s2543_s25, %s2543_s25, %s2544_s6  }
 0x3df PF: > { %s3387_s8 = sld [smem:[#allocation21_spill]]  ;;  %s3388_s20 = sld [smem:[#allocation23_spill]] }
 0x3e0   : > { %p3390_p12 = scmp.ge.s32.totalorder %s2526_s16, 2 }
 0x3e5   : > { %s1549_s22 = sand.u32 1, %s3387_s8   ;;  %p3389_p9 = scmp.ne.s32.totalorder %s3388_s20, 0 }
 0x3e6   : > { %s1550_s23 = scalar_lea.sflag [#allocation4], %s1549_s22 }
 0x3e7   : > { %p2023_p4 = pnand %p3390_p12, %p3389_p9 }
 0x3e9   : > { %2505 = dma.done.wait (!%p2023_p4), %s1550_s23, 4096  }
 0x3ea   : > { %2507 = vsyncadd (!%p2023_p4), %s1550_s23, 4294963200  ;;  %s3391_s21 = sadd.s32 4294967294, %s2526_s16  }
 0x3eb   : > { %s1558_s17 = sand.u32 1, %s3391_s21  }
 0x3ec   : > { %s1559_s30 = scalar_lea.sflag [#allocation13], %s1558_s17 }
 0x3ed   : > { %2509 = dma.done.wait (!%p2023_p4), %s1559_s30, 4096  }
 0x3ee   : > { %2511 = vsyncadd (!%p2023_p4), %s1559_s30, 4294963200  ;;  %s3392_s16 = sld [smem:[#allocation24_spill]]  ;;  %s3393_s1 = sld [smem:[#allocation22_spill]] }
 0x3ef   : > { %s3394_s15 = sld [smem:[#allocation25_spill]]  ;;  %s3395_s13 = smov %s2518_s14 }
 0x3f4   : > { %p29_p10 = scmp.ge.s32.totalorder %s3392_s16, 4   ;;  %s3396_s14 = smov %s3393_s1 }
 0x3f6   :  { %31 = sbr.rel (!%p29_p10) target bundleno = 16 (0x10), region = 152 }
 0x3fd   :  { %1573 = vsyncpa [#allocation3], 1 }
 0x3fe   :  { %1575 = vsyncpa [#allocation3 + $0x1], 1 }
 0x3ff   :  { %1576 = vsyncpa [#allocation6], 1 }
 0x400   :  { %1577 = vsyncpa [#allocation9], 1 }
 0x401   :  { %1578 = vsyncpa [#allocation4], 1 }
 0x402   :  { %1580 = vsyncpa [#allocation4 + $0x1], 1 }
 0x403   :  { %1581 = vsyncpa [#allocation13], 1 }
 0x404   :  { %1583 = vsyncpa [#allocation13 + $0x1], 1 }

</bundles_post_ra>
